<compile_context>
chip_gen: v6e
topology: v6e:2x2x1
jax: 0.10.0
libtpu: 0.0.40
codegen_flags: <defaults>
</compile_context>

<pallas_src>
import functools

import jax
import jax.numpy as jnp
from jax.experimental import pallas as pl
from jax.experimental.pallas import tpu as pltpu


def _round_up(x, m):
    return (x + m - 1) // m * m


def _fused_kernel(num_hidden, e11_ref, e21_ref, e12_ref, e22_ref,
                  wv1_ref, wv2_ref, *refs):
    """Fused similarity + MLP kernel (feature-major, edges on lanes).

    refs layout after the six named inputs:
      (W_0, b_0), ..., (W_{num_hidden-1}, b_{num_hidden-1}),  # hidden (ReLU)
      (W_pred, b_pred),                                        # predict layer
      out_ref
    W_i is (out_i, in_i) (PyTorch orientation), b_i is (out_i, 1).
    """
    out_ref = refs[-1]
    param_refs = refs[:-1]

    def _cos(a_ref, b_ref):
        a = a_ref[...]                            # (L, D, Eb)
        b = b_ref[...]
        dot = jnp.sum(a * b, axis=1)              # (L, Eb)
        na = jnp.sqrt(jnp.sum(a * a, axis=1))
        nb = jnp.sqrt(jnp.sum(b * b, axis=1))
        return dot / jnp.maximum(na * nb, 1e-8)

    cos1 = _cos(e11_ref, e21_ref)                 # (L, Eb)
    cos2 = _cos(e12_ref, e22_ref)                 # (L, Eb)

    # sim^T: weight vectors (L, 1) broadcast over the edge (lane) axis.
    h = wv1_ref[...] * cos1 + wv2_ref[...] * cos2  # (L, Eb)

    # Hidden layers: ReLU(W_i @ h + b_i).  Dropout == identity in eval mode.
    for i in range(num_hidden):
        w = param_refs[2 * i][...]                # (H_i, H_{i-1})
        b = param_refs[2 * i + 1][...]            # (H_i, 1)
        h = jnp.maximum(
            jnp.dot(w, h, preferred_element_type=jnp.float32) + b, 0.0)

    # Predict layer (no ReLU) -> lane-dense (1, Eb) slab.
    wp = param_refs[2 * num_hidden][...]          # (1, H_last)
    bp = param_refs[2 * num_hidden + 1][...]      # (1, 1)
    out_ref[...] = jnp.dot(wp, h, preferred_element_type=jnp.float32) + bp


def mlp_sim_forward(edge_list, z1_trains, z2_trains, weight_vec1, weight_vec2,
                    weights, biases, *, block_edges=1024):
    """Full forward pass.

    edge_list: (E, 2) int32; z*_trains: (L, N, D) float32;
    weight_vec*: (1, L); weights[i]: (out_i, in_i); biases[i]: (out_i, 1)
    (last entry of weights/biases is the predict layer).  Returns (E,) float32.
    Edges are padded internally to a multiple of the edge block and the padded
    tail is sliced off before returning.
    """
    num_edges = edge_list.shape[0]
    num_views, _, emb_dim = z1_trains.shape
    num_hidden = len(weights) - 1

    # Lane-dense edge block: multiple of 128, as large as useful.
    eb = min(_round_up(block_edges, 128), _round_up(num_edges, 128))
    e_pad = _round_up(num_edges, eb)

    # Gather node embeddings per edge, feature-major: (L, D, E) so edges land
    # on the lane axis of every tile in the kernel.
    n1 = edge_list[:, 0]
    n2 = edge_list[:, 1]
    z1t = jnp.transpose(z1_trains, (0, 2, 1))     # (L, D, N)
    z2t = jnp.transpose(z2_trains, (0, 2, 1))
    e11, e21 = z1t[:, :, n1], z1t[:, :, n2]
    e12, e22 = z2t[:, :, n1], z2t[:, :, n2]
    pad = e_pad - num_edges
    if pad:
        pw = ((0, 0), (0, 0), (0, pad))
        e11, e21, e12, e22 = [jnp.pad(a, pw) for a in (e11, e21, e12, e22)]

    wv1 = jnp.asarray(weight_vec1, jnp.float32).reshape(num_views, 1)
    wv2 = jnp.asarray(weight_vec2, jnp.float32).reshape(num_views, 1)

    emb_spec = pl.BlockSpec((num_views, emb_dim, eb), lambda i: (0, 0, i))
    in_specs = [emb_spec, emb_spec, emb_spec, emb_spec,
                pl.BlockSpec((num_views, 1), lambda i: (0, 0)),
                pl.BlockSpec((num_views, 1), lambda i: (0, 0))]
    flat_params = []
    for w, b in zip(weights, biases):
        in_specs.append(pl.BlockSpec(w.shape, lambda i: (0, 0)))  # VMEM-resident
        in_specs.append(pl.BlockSpec(b.shape, lambda i: (0, 0)))
        flat_params.extend([w, b])

    out_specs = pl.BlockSpec((1, eb), lambda i: (0, i))

    # Advisory cost estimate (kernel is memory/overhead bound).
    dims = [num_views] + [int(w.shape[0]) for w in weights]
    mm_flops = 2 * sum(dims[i] * dims[i + 1] for i in range(len(dims) - 1))
    flops = e_pad * (12 * num_views * emb_dim + mm_flops)
    param_bytes = 4 * sum(int(w.size) + int(b.size) for w, b in zip(weights, biases))
    bytes_accessed = 4 * (4 * num_views * emb_dim * e_pad + e_pad) + param_bytes
    cost = pl.CostEstimate(flops=int(flops),
                           transcendentals=int(2 * num_views * e_pad),
                           bytes_accessed=int(bytes_accessed))

    kernel = functools.partial(_fused_kernel, num_hidden)

    out = pl.pallas_call(
        kernel,
        out_shape=jax.ShapeDtypeStruct((1, e_pad), jnp.float32),
        grid=(e_pad // eb,),
        in_specs=in_specs,
        out_specs=out_specs,
        compiler_params=pltpu.CompilerParams(
            dimension_semantics=("parallel",),
        ),
        cost_estimate=cost,
    )(e11, e21, e12, e22, wv1, wv2, *flat_params)

    return out.reshape(-1)[:num_edges]            # prediction.view(-1)


def init_params(key, lay_1_dim, hidden_layer):
    """Deterministic init mirroring the module: Linear(in, out).weight is
    (out, in) with xavier_uniform_ (hidden) / kaiming_uniform_ (predict),
    all biases zero (stored as (out, 1) columns for the feature-major kernel)."""
    dims = [lay_1_dim] + list(hidden_layer)
    weights, biases = [], []
    for i in range(len(hidden_layer)):
        key, sub = jax.random.split(key)
        fan_in, fan_out = dims[i], dims[i + 1]
        bound = (6.0 / (fan_in + fan_out)) ** 0.5          # xavier_uniform
        weights.append(jax.random.uniform(sub, (fan_out, fan_in), jnp.float32,
                                          -bound, bound))
        biases.append(jnp.zeros((fan_out, 1), jnp.float32))
    key, sub = jax.random.split(key)
    fan_in = hidden_layer[-1]
    bound = (3.0 / fan_in) ** 0.5                          # kaiming_uniform(a=1)
    weights.append(jax.random.uniform(sub, (1, fan_in), jnp.float32, -bound, bound))
    biases.append(jnp.zeros((1, 1), jnp.float32))
    return weights, biases


def reference_forward(edge_list, z1_trains, z2_trains, weight_vec1, weight_vec2,
                      weights, biases):
    """Pure-JAX reference matching the PyTorch forward (eval mode)."""
    n1, n2 = edge_list[:, 0], edge_list[:, 1]

    def cos(a, b):
        dot = jnp.sum(a * b, axis=-1)
        na = jnp.sqrt(jnp.sum(a * a, axis=-1))
        nb = jnp.sqrt(jnp.sum(b * b, axis=-1))
        return dot / jnp.maximum(na * nb, 1e-8)

    # (the original also computes per-edge dot-product features, but they are
    #  dead code: only the cosine similarities feed the MLP)
    cos1 = cos(z1_trains[:, n1, :], z1_trains[:, n2, :])   # (L, E)
    cos2 = cos(z2_trains[:, n1, :], z2_trains[:, n2, :])
    embs_1, embs_2 = cos1.T, cos2.T                        # (E, L)
    sim = weight_vec1 * embs_1 + weight_vec2 * embs_2      # (E, L)

    h = sim
    for w, b in zip(weights[:-1], biases[:-1]):
        h = jnp.maximum(
            jnp.dot(h, w.T, precision=jax.lax.Precision.HIGHEST) + b.reshape(1, -1),
            0.0)
    out = (jnp.dot(h, weights[-1].T, precision=jax.lax.Precision.HIGHEST)
           + biases[-1].reshape(1, -1))
    return out.reshape(-1)


if __name__ == "__main__":
    key = jax.random.PRNGKey(0)
    num_views = 4            # first dim of z1_trains == lay_1_dim
    num_nodes = 64
    emb_dim = 16
    num_edges = 300          # not a multiple of the block -> exercises padding
    hidden_layer = [32, 32]  # MLP hidden dims

    k_z1, k_z2, k_e, k_w1, k_w2, k_p = jax.random.split(key, 6)
    z1_trains = jax.random.normal(k_z1, (num_views, num_nodes, emb_dim), jnp.float32)
    z2_trains = jax.random.normal(k_z2, (num_views, num_nodes, emb_dim), jnp.float32)
    edge_list = jax.random.randint(k_e, (num_edges, 2), 0, num_nodes, dtype=jnp.int32)
    weight_vec1 = jax.random.normal(k_w1, (1, num_views), jnp.float32)
    weight_vec2 = jax.random.normal(k_w2, (1, num_views), jnp.float32)
    weights, biases = init_params(k_p, num_views, hidden_layer)

    y = mlp_sim_forward(edge_list, z1_trains, z2_trains, weight_vec1, weight_vec2,
                        weights, biases, block_edges=256)
    y = jax.block_until_ready(y)

    y_ref = reference_forward(edge_list, z1_trains, z2_trains,
                              weight_vec1, weight_vec2, weights, biases)
    assert y.shape == (num_edges,)
    assert jnp.allclose(y, y_ref, atol=1e-4, rtol=1e-4), (y, y_ref)
    print("KERNEL_OK")
</pallas_src>

<mosaic_0001>
module attributes {stable_mosaic.version = 11 : i64} {
  func.func @_fused_kernel(%arg0: i32, %arg1: memref<4x16x256xf32, #tpu.memory_space<vmem>>, %arg2: memref<4x16x256xf32, #tpu.memory_space<vmem>>, %arg3: memref<4x16x256xf32, #tpu.memory_space<vmem>>, %arg4: memref<4x16x256xf32, #tpu.memory_space<vmem>>, %arg5: memref<4x1xf32, #tpu.memory_space<vmem>>, %arg6: memref<4x1xf32, #tpu.memory_space<vmem>>, %arg7: memref<32x4xf32, #tpu.memory_space<vmem>>, %arg8: memref<32x1xf32, #tpu.memory_space<vmem>>, %arg9: memref<32x32xf32, #tpu.memory_space<vmem>>, %arg10: memref<32x1xf32, #tpu.memory_space<vmem>>, %arg11: memref<1x32xf32, #tpu.memory_space<vmem>>, %arg12: memref<1x1xf32, #tpu.memory_space<vmem>>, %arg13: memref<1x256xf32, #tpu.memory_space<vmem>>) attributes {dimension_semantics = [#tpu.dimension_semantics<parallel>], iteration_bounds = array<i64: 2>, scalar_prefetch = 0 : i64, scratch_operands = 0 : i64, tpu.core_type = #tpu.core_type<tc>, window_params = [{transform_indices = @transform_0, window_bounds = array<i64: 4, 16, 256>}, {transform_indices = @transform_1, window_bounds = array<i64: 4, 16, 256>}, {transform_indices = @transform_2, window_bounds = array<i64: 4, 16, 256>}, {transform_indices = @transform_3, window_bounds = array<i64: 4, 16, 256>}, {pipeline_mode = #tpu.pipeline_mode<synchronous>, transform_indices = @transform_4, window_bounds = array<i64: 4, 1>}, {pipeline_mode = #tpu.pipeline_mode<synchronous>, transform_indices = @transform_5, window_bounds = array<i64: 4, 1>}, {pipeline_mode = #tpu.pipeline_mode<synchronous>, transform_indices = @transform_6, window_bounds = array<i64: 32, 4>}, {pipeline_mode = #tpu.pipeline_mode<synchronous>, transform_indices = @transform_7, window_bounds = array<i64: 32, 1>}, {pipeline_mode = #tpu.pipeline_mode<synchronous>, transform_indices = @transform_8, window_bounds = array<i64: 32, 32>}, {pipeline_mode = #tpu.pipeline_mode<synchronous>, transform_indices = @transform_9, window_bounds = array<i64: 32, 1>}, {pipeline_mode = #tpu.pipeline_mode<synchronous>, transform_indices = @transform_10, window_bounds = array<i64: 1, 32>}, {pipeline_mode = #tpu.pipeline_mode<synchronous>, transform_indices = @transform_11, window_bounds = array<i64: 1, 1>}, {transform_indices = @transform_12, window_bounds = array<i64: 1, 256>}]} {
    %c0 = arith.constant 0 : index
    %c0_0 = arith.constant 0 : index
    %c0_1 = arith.constant 0 : index
    %0 = vector.load %arg1[%c0, %c0_0, %c0_1] : memref<4x16x256xf32, #tpu.memory_space<vmem>>, vector<4x16x256xf32>
    %c0_2 = arith.constant 0 : index
    %c0_3 = arith.constant 0 : index
    %c0_4 = arith.constant 0 : index
    %1 = vector.load %arg2[%c0_2, %c0_3, %c0_4] : memref<4x16x256xf32, #tpu.memory_space<vmem>>, vector<4x16x256xf32>
    %2 = arith.mulf %0, %1 : vector<4x16x256xf32>
    %cst = arith.constant dense<0.000000e+00> : vector<4x256xf32>
    %3 = vector.multi_reduction <add>, %2, %cst [1] : vector<4x16x256xf32> to vector<4x256xf32>
    %4 = arith.mulf %0, %0 : vector<4x16x256xf32>
    %cst_5 = arith.constant dense<0.000000e+00> : vector<4x256xf32>
    %5 = vector.multi_reduction <add>, %4, %cst_5 [1] : vector<4x16x256xf32> to vector<4x256xf32>
    %6 = math.sqrt %5 : vector<4x256xf32>
    %7 = arith.mulf %1, %1 : vector<4x16x256xf32>
    %cst_6 = arith.constant dense<0.000000e+00> : vector<4x256xf32>
    %8 = vector.multi_reduction <add>, %7, %cst_6 [1] : vector<4x16x256xf32> to vector<4x256xf32>
    %9 = math.sqrt %8 : vector<4x256xf32>
    %10 = arith.mulf %6, %9 : vector<4x256xf32>
    %cst_7 = arith.constant 9.99999993E-9 : f32
    %11 = vector.broadcast %cst_7 : f32 to vector<4x256xf32>
    %12 = arith.maximumf %10, %11 : vector<4x256xf32>
    %13 = arith.divf %3, %12 : vector<4x256xf32>
    %c0_8 = arith.constant 0 : index
    %c0_9 = arith.constant 0 : index
    %c0_10 = arith.constant 0 : index
    %14 = vector.load %arg3[%c0_8, %c0_9, %c0_10] : memref<4x16x256xf32, #tpu.memory_space<vmem>>, vector<4x16x256xf32>
    %c0_11 = arith.constant 0 : index
    %c0_12 = arith.constant 0 : index
    %c0_13 = arith.constant 0 : index
    %15 = vector.load %arg4[%c0_11, %c0_12, %c0_13] : memref<4x16x256xf32, #tpu.memory_space<vmem>>, vector<4x16x256xf32>
    %16 = arith.mulf %14, %15 : vector<4x16x256xf32>
    %cst_14 = arith.constant dense<0.000000e+00> : vector<4x256xf32>
    %17 = vector.multi_reduction <add>, %16, %cst_14 [1] : vector<4x16x256xf32> to vector<4x256xf32>
    %18 = arith.mulf %14, %14 : vector<4x16x256xf32>
    %cst_15 = arith.constant dense<0.000000e+00> : vector<4x256xf32>
    %19 = vector.multi_reduction <add>, %18, %cst_15 [1] : vector<4x16x256xf32> to vector<4x256xf32>
    %20 = math.sqrt %19 : vector<4x256xf32>
    %21 = arith.mulf %15, %15 : vector<4x16x256xf32>
    %cst_16 = arith.constant dense<0.000000e+00> : vector<4x256xf32>
    %22 = vector.multi_reduction <add>, %21, %cst_16 [1] : vector<4x16x256xf32> to vector<4x256xf32>
    %23 = math.sqrt %22 : vector<4x256xf32>
    %24 = arith.mulf %20, %23 : vector<4x256xf32>
    %cst_17 = arith.constant 9.99999993E-9 : f32
    %25 = vector.broadcast %cst_17 : f32 to vector<4x256xf32>
    %26 = arith.maximumf %24, %25 : vector<4x256xf32>
    %27 = arith.divf %17, %26 : vector<4x256xf32>
    %c0_18 = arith.constant 0 : index
    %c0_19 = arith.constant 0 : index
    %28 = vector.load %arg5[%c0_18, %c0_19] : memref<4x1xf32, #tpu.memory_space<vmem>>, vector<4x1xf32>
    %29 = vector.broadcast %28 : vector<4x1xf32> to vector<4x256xf32>
    %30 = arith.mulf %29, %13 : vector<4x256xf32>
    %c0_20 = arith.constant 0 : index
    %c0_21 = arith.constant 0 : index
    %31 = vector.load %arg6[%c0_20, %c0_21] : memref<4x1xf32, #tpu.memory_space<vmem>>, vector<4x1xf32>
    %32 = vector.broadcast %31 : vector<4x1xf32> to vector<4x256xf32>
    %33 = arith.mulf %32, %27 : vector<4x256xf32>
    %34 = arith.addf %30, %33 : vector<4x256xf32>
    %c0_22 = arith.constant 0 : index
    %c0_23 = arith.constant 0 : index
    %35 = vector.load %arg7[%c0_22, %c0_23] : memref<32x4xf32, #tpu.memory_space<vmem>>, vector<32x4xf32>
    %c0_24 = arith.constant 0 : index
    %c0_25 = arith.constant 0 : index
    %36 = vector.load %arg8[%c0_24, %c0_25] : memref<32x1xf32, #tpu.memory_space<vmem>>, vector<32x1xf32>
    %cst_26 = arith.constant dense<0.000000e+00> : vector<32x256xf32>
    %37 = tpu.matmul %35, %34, %cst_26 {dimension_numbers = #tpu.dot_dimension_numbers<[1], [0], [0], [1], [0, 0, 1, 1], [], []>} : vector<32x4xf32>, vector<4x256xf32>, vector<32x256xf32> -> vector<32x256xf32>
    %38 = vector.broadcast %36 : vector<32x1xf32> to vector<32x256xf32>
    %39 = arith.addf %37, %38 : vector<32x256xf32>
    %cst_27 = arith.constant 0.000000e+00 : f32
    %40 = vector.broadcast %cst_27 : f32 to vector<32x256xf32>
    %41 = arith.maximumf %39, %40 : vector<32x256xf32>
    %c0_28 = arith.constant 0 : index
    %c0_29 = arith.constant 0 : index
    %42 = vector.load %arg9[%c0_28, %c0_29] : memref<32x32xf32, #tpu.memory_space<vmem>>, vector<32x32xf32>
    %c0_30 = arith.constant 0 : index
    %c0_31 = arith.constant 0 : index
    %43 = vector.load %arg10[%c0_30, %c0_31] : memref<32x1xf32, #tpu.memory_space<vmem>>, vector<32x1xf32>
    %cst_32 = arith.constant dense<0.000000e+00> : vector<32x256xf32>
    %44 = tpu.matmul %42, %41, %cst_32 {dimension_numbers = #tpu.dot_dimension_numbers<[1], [0], [0], [1], [0, 0, 1, 1], [], []>} : vector<32x32xf32>, vector<32x256xf32>, vector<32x256xf32> -> vector<32x256xf32>
    %45 = vector.broadcast %43 : vector<32x1xf32> to vector<32x256xf32>
    %46 = arith.addf %44, %45 : vector<32x256xf32>
    %cst_33 = arith.constant 0.000000e+00 : f32
    %47 = vector.broadcast %cst_33 : f32 to vector<32x256xf32>
    %48 = arith.maximumf %46, %47 : vector<32x256xf32>
    %c0_34 = arith.constant 0 : index
    %c0_35 = arith.constant 0 : index
    %49 = vector.load %arg11[%c0_34, %c0_35] : memref<1x32xf32, #tpu.memory_space<vmem>>, vector<1x32xf32>
    %c0_36 = arith.constant 0 : index
    %c0_37 = arith.constant 0 : index
    %50 = vector.load %arg12[%c0_36, %c0_37] : memref<1x1xf32, #tpu.memory_space<vmem>>, vector<1x1xf32>
    %cst_38 = arith.constant dense<0.000000e+00> : vector<1x256xf32>
    %51 = tpu.matmul %49, %48, %cst_38 {dimension_numbers = #tpu.dot_dimension_numbers<[1], [0], [0], [1], [0, 0, 1, 1], [], []>} : vector<1x32xf32>, vector<32x256xf32>, vector<1x256xf32> -> vector<1x256xf32>
    %52 = vector.broadcast %50 : vector<1x1xf32> to vector<1x256xf32>
    %53 = arith.addf %51, %52 : vector<1x256xf32>
    %c0_39 = arith.constant 0 : index
    %c0_40 = arith.constant 0 : index
    %54 = vector.load %arg13[%c0_39, %c0_40] : memref<1x256xf32, #tpu.memory_space<vmem>>, vector<1x256xf32>
    tpu.vector_store %arg13[%c0_39, %c0_40], %53 {strides = array<i32>} : memref<1x256xf32, #tpu.memory_space<vmem>>, vector<1x256xf32>,
    return
  }
  func.func @transform_0(%arg0: i32) -> (i32, i32, i32) {
    %c0_i32 = arith.constant 0 : i32
    %c0_i32_0 = arith.constant 0 : i32
    %c0_i32_1 = arith.constant 0 : i32
    return %c0_i32, %c0_i32_0, %arg0 : i32, i32, i32
  }
  func.func @transform_1(%arg0: i32) -> (i32, i32, i32) {
    %c0_i32 = arith.constant 0 : i32
    %c0_i32_0 = arith.constant 0 : i32
    %c0_i32_1 = arith.constant 0 : i32
    return %c0_i32, %c0_i32_0, %arg0 : i32, i32, i32
  }
  func.func @transform_2(%arg0: i32) -> (i32, i32, i32) {
    %c0_i32 = arith.constant 0 : i32
    %c0_i32_0 = arith.constant 0 : i32
    %c0_i32_1 = arith.constant 0 : i32
    return %c0_i32, %c0_i32_0, %arg0 : i32, i32, i32
  }
  func.func @transform_3(%arg0: i32) -> (i32, i32, i32) {
    %c0_i32 = arith.constant 0 : i32
    %c0_i32_0 = arith.constant 0 : i32
    %c0_i32_1 = arith.constant 0 : i32
    return %c0_i32, %c0_i32_0, %arg0 : i32, i32, i32
  }
  func.func @transform_4(%arg0: i32) -> (i32, i32) {
    %c0_i32 = arith.constant 0 : i32
    %c0_i32_0 = arith.constant 0 : i32
    %c0_i32_1 = arith.constant 0 : i32
    return %c0_i32, %c0_i32_0 : i32, i32
  }
  func.func @transform_5(%arg0: i32) -> (i32, i32) {
    %c0_i32 = arith.constant 0 : i32
    %c0_i32_0 = arith.constant 0 : i32
    %c0_i32_1 = arith.constant 0 : i32
    return %c0_i32, %c0_i32_0 : i32, i32
  }
  func.func @transform_6(%arg0: i32) -> (i32, i32) {
    %c0_i32 = arith.constant 0 : i32
    %c0_i32_0 = arith.constant 0 : i32
    %c0_i32_1 = arith.constant 0 : i32
    return %c0_i32, %c0_i32_0 : i32, i32
  }
  func.func @transform_7(%arg0: i32) -> (i32, i32) {
    %c0_i32 = arith.constant 0 : i32
    %c0_i32_0 = arith.constant 0 : i32
    %c0_i32_1 = arith.constant 0 : i32
    return %c0_i32, %c0_i32_0 : i32, i32
  }
  func.func @transform_8(%arg0: i32) -> (i32, i32) {
    %c0_i32 = arith.constant 0 : i32
    %c0_i32_0 = arith.constant 0 : i32
    %c0_i32_1 = arith.constant 0 : i32
    return %c0_i32, %c0_i32_0 : i32, i32
  }
  func.func @transform_9(%arg0: i32) -> (i32, i32) {
    %c0_i32 = arith.constant 0 : i32
    %c0_i32_0 = arith.constant 0 : i32
    %c0_i32_1 = arith.constant 0 : i32
    return %c0_i32, %c0_i32_0 : i32, i32
  }
  func.func @transform_10(%arg0: i32) -> (i32, i32) {
    %c0_i32 = arith.constant 0 : i32
    %c0_i32_0 = arith.constant 0 : i32
    %c0_i32_1 = arith.constant 0 : i32
    return %c0_i32, %c0_i32_0 : i32, i32
  }
  func.func @transform_11(%arg0: i32) -> (i32, i32) {
    %c0_i32 = arith.constant 0 : i32
    %c0_i32_0 = arith.constant 0 : i32
    %c0_i32_1 = arith.constant 0 : i32
    return %c0_i32, %c0_i32_0 : i32, i32
  }
  func.func @transform_12(%arg0: i32) -> (i32, i32) {
    %c0_i32 = arith.constant 0 : i32
    %c0_i32_0 = arith.constant 0 : i32
    return %c0_i32, %arg0 : i32, i32
  }
}

</mosaic_0001>

<bundles_post_ra>
// kernel: tpu_custom_call.1
= control target key start
LH: loop header
LB: loop body
LE: loop exit
PB: predicated region body
PF: predicated region fallthrough
CT: control target
= control target key end

     0   :  { %s3671_s0 = inlined_call_operand.hbm [shape: f32[4,16,512], index: 0, kind: input, shape index: {}]   ;;  %s3672_s1 = inlined_call_operand.hbm [shape: f32[4,16,512], index: 1, kind: input, shape index: {}]   ;;  %s3673_s2 = inlined_call_operand.hbm [shape: f32[4,16,512], index: 2, kind: input, shape index: {}]   ;;  %s3674_s3 = inlined_call_operand.hbm [shape: f32[4,16,512], index: 3, kind: input, shape index: {}]   ;;  %s3675_s4 = inlined_call_operand.vmem [shape: f32[4,1], index: 4, kind: input, shape index: {}]   ;;  %s3676_s5 = inlined_call_operand.vmem [shape: f32[4,1], index: 5, kind: input, shape index: {}]   ;;  %s3677_s6 = inlined_call_operand.vmem [shape: f32[32,4], index: 6, kind: input, shape index: {}]   ;;  %s3678_s7 = inlined_call_operand.vmem [shape: f32[32,1], index: 7, kind: input, shape index: {}]   ;;  %s3679_s8 = inlined_call_operand.vmem [shape: f32[32,32], index: 8, kind: input, shape index: {}]   ;;  %s3680_s9 = inlined_call_operand.vmem [shape: f32[32,1], index: 9, kind: input, shape index: {}]   ;;  %s3681_s10 = inlined_call_operand.vmem [shape: f32[1,32], index: 10, kind: input, shape index: {}]   ;;  %s3682_s11 = inlined_call_operand.<no memory space> [shape: f32[1,1], index: 11, kind: input, shape index: {}]   ;;  %s3683_s12 = inlined_call_operand.hbm [shape: f32[1,512], index: 12, kind: output, shape index: {}]  }
   0x1   :  { %3724 = sst [smem:[#allocation41_spill]] %s3671_s0  ;;  %v17_v0 = vstv %s3682_s11 }
   0x2   :  { %3725 = sst [smem:[#allocation42_spill]] %s3672_s1  ;;  %18 = vst [vmem:[#allocation2] sm:$0x1] %v17_v0 }
   0x3   :  { %3726 = sst [smem:[#allocation43_spill]] %s3677_s6 }
   0x4   :  { %3727 = sst [smem:[#allocation44_spill]] %s3679_s8 }
   0x5   :  { %3728 = sst [smem:[#allocation45_spill]] %s3681_s10 }
   0x6   :  { %3729 = sst [smem:[#allocation46_spill]] %s3683_s12 }
   0x7   :  { %19 = vsyncpa [#allocation4], 0 }
   0x8   :  { %21 = vsyncpa [#allocation4 + $0x1], 0 }
   0x9   :  { %22 = vsyncpa [#allocation7], 0 }
   0xa   :  { %24 = vsyncpa [#allocation7 + $0x1], 0 }
   0xb   :  { %25 = vsyncpa [#allocation10], 0 }
   0xc   :  { %27 = vsyncpa [#allocation10 + $0x1], 0 }
   0xd   :  { %28 = vsyncpa [#allocation5], 0 }
   0xe   :  { %30 = vsyncpa [#allocation5 + $0x1], 0  ;;  %s2407_s23 = smov 0   ;;  %s2409_s24 = smov 0  }
   0xf   :  { %s2411_s25 = smov 0   ;;  %s2413_s26 = smov 0  }
  0x10 LB: > { %3730 = sst [smem:[#allocation16_spill]] %s2314_s23  ;;  %s2428_s11 = sadd.s32 4294967295, %s2326_s26   ;;  %s2326_s26 = sphi %s2413_s26, %s3811_s26   ;;  %s2322_s25 = sphi %s2411_s25, %s3813_s25   ;;  %s2318_s24 = sphi %s2409_s24, %s3815_s24   ;;  %s2314_s23 = sphi %s2407_s23, %s3814_s23  }
  0x11   : > { %3731 = sst [smem:[#allocation17_spill]] %s2322_s25  ;;  %s1935_s27 = sadd.s32 4294967294, %s2326_s26  }
  0x12   : > { %3732 = sst [smem:[#allocation18_spill]] %s2326_s26  ;;  %s2432_s28 = sadd.s32 1, %s2326_s26  }
  0x13   : > { %3733 = sst [smem:[#allocation19_spill]] %s2432_s28  ;;  %s43_s29 = sadd.s32 1, %s2322_s25 }
  0x14   : > { %s40_s30 = ssub.s32 %s2326_s26, %s2432_s28  ;;  %p50_p0 = scmp.ne.s32.totalorder %s2322_s25, %s2318_s24 }
  0x15   : > { %p41_p1 = scmp.eq.s32.totalorder %s40_s30, 0  ;;  %p51_p2 = scmp.eq.s32.totalorder %s2326_s26, 0 }
  0x16   : > { %p56_p3 = scmp.ne.s32.totalorder %s2318_s24, %s2314_s23  ;;  %p57_p4 = scmp.eq.s32.totalorder %s2428_s11, 0 }
  0x17   : > { %s2444_s13 = scalar_select %p41_p1, %s2322_s25, %s43_s29  }
  0x18   : > { %p52_p5 = por %p51_p2, %p50_p0  ;;  %p2446_p6 = por %p57_p4, %p56_p3 }
  0x19   : > { %3734 = sst [smem:[#allocation20_spill]] %s2444_s13  ;;  %p326_p7 = scmp.eq.s32.totalorder %s2428_s11, 1 }
  0x1a   : > { %s3735_s14 = scalar_select %p2446_p6, 1, 0 }
  0x1b   : > { %p332_p8 = scmp.eq.s32.totalorder %s1935_s27, 1  ;;  %p2004_p10 = scmp.lt.s32.totalorder %s2326_s26, 2 }
  0x1c   : > { %p2453_p11 = por %p326_p7, %p50_p0  ;;  %s2462_s17 = sand.u32 1, %s2322_s25  }
  0x1d   : > { %p2457_p12 = por %p332_p8, %p56_p3  ;;  %s2465_s18 = sshll.u32 %s2326_s26, 8 }
  0x1e   : > { %s3736_s15 = scalar_select %p2453_p11, 1, 0 }
  0x1f   : > { %s3738_s16 = scalar_select %p2457_p12, 1, 0 }
  0x20   : > { %3737 = sst [smem:[#allocation21_spill]] %s3736_s15  ;;  %s2468_s19 = sshll.u32 %s2462_s17, 7 }
  0x21   : > { %3739 = sst [smem:[#allocation22_spill]] %s3738_s16  ;;  %p2470_p13 = pnand %p2004_p10, %p52_p5 }
  0x22   : > { %s397_s21 = sand.u32 1, %s2326_s26   ;;  %s3741_s1 = sld [smem:[#allocation42_spill]] }
  0x23   : > { %s401_s30 = scalar_lea.vmem [#allocation6], %s2468_s19  ;;  %s2486_s25 = scalar_lea.sflag [#allocation7], %s397_s21 }
  0x24   : > { %s408_s13 = sshll.u32 %s401_s30, 4  ;;  %p2492_p3 = pneg %p2470_p13  ;;  %s2483_s13 = int_to_ptr.vmem [resolvable:$true] %s408_s13 }
  0x28   : > { %s2479_s29 = scalar_lea.hbm %s3741_s1, %s2465_s18  ;;  %s2147_s30 = scalar_lea.hbm %s3741_s1, 4096 }
  0x29   : > { %s2142_s28 = scalar_lea.hbm %s2479_s29, 2048  ;;  %p2148_p7 = scmp.lt.s32.totalorder %s2479_s29, %s3741_s1 }
  0x2a   : > { %p2143_p2 = scmp.ne.s32.totalorder %s2479_s29, %s2142_s28  ;;  %p2149_p8 = scmp.lt.s32.totalorder %s2147_s30, %s2142_s28 }
  0x2c   : > { %p2145_p4 = pnand %p2492_p3, %p2143_p2  ;;  %p2150_p10 = por %p2149_p8, %p2148_p7 }
  0x2e   : > { %p2146_p5 = pneg %p2145_p4 }
  0x30   : > { %p2151_p9 = pnand %p2150_p10, %p2146_p5 }
  0x32   : > { %2154 = shalt.err (!%p2151_p9)
}
  0x33   : > { %s2155_s21 = scalar_lea.vmem %s2483_s13, 2048  ;;  %s2328_s15 = smov [#allocation6]  }
  0x34   : > { %p2156_p0 = scmp.ne.s32.totalorder %s2483_s13, %s2155_s21  ;;  %s2160_s22 = sshll.u32 %s2328_s15, 4  ;;  %s2161_s22 = int_to_ptr.vmem [resolvable:$false] %s2160_s22 }
  0x35   : > { %s2162_s27 = scalar_lea.vmem %s2161_s22, 4096  ;;  %p2163_p1 = scmp.lt.s32.totalorder %s2483_s13, %s2161_s22 }
  0x36   : > { %p2158_p2 = pnand %p2156_p0, %p2492_p3  ;;  %p2164_p12 = scmp.lt.s32.totalorder %s2162_s27, %s2155_s21 }
  0x38   : > { %p2159_p4 = pneg %p2158_p2  ;;  %p2165_p11 = por %p2164_p12, %p2163_p1 }
  0x3a   : > { %p2166_p6 = pnand %p2165_p11, %p2159_p4 }
  0x3c   : > { %2169 = shalt.err (!%p2166_p6)
}
  0x3d   : > { %s3694_s12 = smov 512   ;;  %s3696_s23 = smov 256  }
  0x3e   : > { %s3698_s28 = smov 16   ;;  %p3743_p6 = scmp.lt.s32.totalorder %s2326_s26, 3 }
  0x3f   : > { %1993 = dma.hbm_to_vmem [thread:$0]  (!%p2470_p13), %s2479_s29, 2048, %s2483_s13, %s2486_s25, %s3694_s12, %s3696_s23, %s3698_s28  }
  0x40   : > { %p3744_p9 = scmp.ge.s32.totalorder %s2326_s26, 1  ;;  %s3746_s0 = sld [smem:[#allocation41_spill]] }
  0x41   : > { %s380_s27 = scalar_lea.vmem [#allocation3], %s2468_s19  ;;  %s2539_s29 = scalar_lea.hbm %s3673_s2, %s2465_s18 }
  0x42   : > { %p2522_p11 = pnand %p3744_p9, %p3743_p6  ;;  %s387_s1 = sshll.u32 %s380_s27, 4  ;;  %s2533_s1 = int_to_ptr.vmem [resolvable:$true] %s387_s1 }
  0x43   : > { %s377_s12 = scalar_lea.sflag [#allocation4], %s2462_s17 }
  0x44   : > { %s3745_s15 = scalar_select %p2522_p11, 1, 0 }
  0x46   : > { %s2530_s22 = scalar_lea.hbm %s3746_s0, %s2465_s18  ;;  %s2175_s28 = scalar_lea.hbm %s3746_s0, 4096 }
  0x47   : > { %s2170_s23 = scalar_lea.hbm %s2530_s22, 2048  ;;  %p2176_p5 = scmp.lt.s32.totalorder %s2530_s22, %s3746_s0 }
  0x48   : > { %p2171_p12 = scmp.ne.s32.totalorder %s2530_s22, %s2170_s23  ;;  %p2177_p7 = scmp.lt.s32.totalorder %s2175_s28, %s2170_s23 }
  0x4a   : > { %p2173_p0 = pnand %p2171_p12, %p2492_p3  ;;  %p2178_p8 = por %p2177_p7, %p2176_p5 }
  0x4c   : > { %p2174_p1 = pneg %p2173_p0 }
  0x4e   : > { %p2179_p10 = pnand %p2178_p8, %p2174_p1 }
  0x50   : > { %2182 = shalt.err (!%p2179_p10)
}
  0x51   : > { %s2183_s10 = scalar_lea.vmem %s2533_s1, 2048  ;;  %s2332_s27 = smov [#allocation3]  }
  0x52   : > { %p2184_p2 = scmp.ne.s32.totalorder %s2533_s1, %s2183_s10  ;;  %s2188_s13 = sshll.u32 %s2332_s27, 4  ;;  %s2189_s13 = int_to_ptr.vmem [resolvable:$false] %s2188_s13 }
  0x53   : > { %s2190_s30 = scalar_lea.vmem %s2189_s13, 4096  ;;  %p2191_p9 = scmp.lt.s32.totalorder %s2533_s1, %s2189_s13 }
  0x54   : > { %p2186_p4 = pnand %p2184_p2, %p2492_p3  ;;  %p2192_p12 = scmp.lt.s32.totalorder %s2190_s30, %s2183_s10 }
  0x56   : > { %p2187_p6 = pneg %p2186_p4  ;;  %p2193_p0 = por %p2192_p12, %p2191_p9 }
  0x58   : > { %p2194_p11 = pnand %p2193_p0, %p2187_p6 }
  0x5a   : > { %2197 = shalt.err (!%p2194_p11)
}
  0x5b   : > { %s3747_s8 = smov 16   ;;  %s3748_s26 = smov 256  }
  0x5c   : > { %s3749_s23 = smov 512   ;;  %s422_s28 = scalar_lea.vmem [#allocation8], %s2468_s19 }
  0x5d   : > { %1990 = dma.hbm_to_vmem [thread:$0]  (!%p2470_p13), %s2530_s22, 2048, %s2533_s1, %s377_s12, %s3749_s23, %s3748_s26, %s3747_s8  }
  0x5e   : > { %s429_s21 = sshll.u32 %s422_s28, 4  ;;  %s2198_s10 = scalar_lea.hbm %s2539_s29, 2048  ;;  %s430_s21 = int_to_ptr.vmem [resolvable:$true] %s429_s21 }
  0x5f   : > { %p2199_p1 = scmp.ne.s32.totalorder %s2539_s29, %s2198_s10  ;;  %s2203_s30 = scalar_lea.hbm %s3673_s2, 4096 }
  0x60   : > { %p2204_p7 = scmp.lt.s32.totalorder %s2539_s29, %s3673_s2  ;;  %p2205_p8 = scmp.lt.s32.totalorder %s2203_s30, %s2198_s10 }
  0x61   : > { %p2201_p11 = pnand %p2199_p1, %p2492_p3 }
  0x62   : > { %p2206_p10 = por %p2205_p8, %p2204_p7 }
  0x63   : > { %p2202_p5 = pneg %p2201_p11 }
  0x65   : > { %p2207_p2 = pnand %p2206_p10, %p2202_p5 }
  0x67   : > { %2210 = shalt.err (!%p2207_p2)
}
  0x68   : > { %s2211_s1 = scalar_lea.vmem %s430_s21, 2048  ;;  %s2333_s12 = smov [#allocation8]  }
  0x69   : > { %p2212_p4 = scmp.ne.s32.totalorder %s430_s21, %s2211_s1  ;;  %s2216_s22 = sshll.u32 %s2333_s12, 4  ;;  %s2217_s22 = int_to_ptr.vmem [resolvable:$false] %s2216_s22 }
  0x6a   : > { %s2218_s28 = scalar_lea.vmem %s2217_s22, 4096  ;;  %p2219_p12 = scmp.lt.s32.totalorder %s430_s21, %s2217_s22 }
  0x6b   : > { %p2214_p6 = pnand %p2212_p4, %p2492_p3  ;;  %p2220_p0 = scmp.lt.s32.totalorder %s2218_s28, %s2211_s1 }
  0x6d   : > { %p2215_p9 = pneg %p2214_p6  ;;  %p2221_p1 = por %p2220_p0, %p2219_p12 }
  0x6f   : > { %p2222_p11 = pnand %p2221_p1, %p2215_p9 }
  0x71   : > { %2225 = shalt.err (!%p2222_p11)
}
  0x72   : > { %1996 = dma.hbm_to_vmem [thread:$0]  (!%p2470_p13), %s2539_s29, 2048, %s430_s21, %s2486_s25, %s3749_s23, %s3748_s26, %s3747_s8  }
  0x73   : > { %s2590_s10 = scalar_lea.hbm %s3674_s3, %s2465_s18  ;;  %s443_s27 = scalar_lea.vmem [#allocation9], %s2468_s19 }
  0x74   : > { %s450_s13 = sshll.u32 %s443_s27, 4  ;;  %s440_s30 = scalar_lea.sflag [#allocation10], %s2462_s17  ;;  %s2593_s13 = int_to_ptr.vmem [resolvable:$true] %s450_s13 }
  0x75   : > { %s2226_s1 = scalar_lea.hbm %s2590_s10, 2048  ;;  %s2231_s29 = scalar_lea.hbm %s3674_s3, 4096 }
  0x76   : > { %p2227_p5 = scmp.ne.s32.totalorder %s2590_s10, %s2226_s1  ;;  %p2232_p10 = scmp.lt.s32.totalorder %s2590_s10, %s3674_s3 }
  0x77   : > { %p2233_p2 = scmp.lt.s32.totalorder %s2231_s29, %s2226_s1 }
  0x78   : > { %p2229_p7 = pnand %p2227_p5, %p2492_p3 }
  0x79   : > { %p2234_p4 = por %p2233_p2, %p2232_p10 }
  0x7a   : > { %p2230_p8 = pneg %p2229_p7 }
  0x7c   : > { %p2235_p6 = pnand %p2234_p4, %p2230_p8 }
  0x7e   : > { %2238 = shalt.err (!%p2235_p6)
}
  0x7f   : > { %s2239_s17 = scalar_lea.vmem %s2593_s13, 2048  ;;  %s2334_s19 = smov [#allocation9]  }
  0x80   : > { %p2240_p9 = scmp.ne.s32.totalorder %s2593_s13, %s2239_s17  ;;  %s2244_s22 = sshll.u32 %s2334_s19, 4  ;;  %s2245_s22 = int_to_ptr.vmem [resolvable:$false] %s2244_s22 }
  0x81   : > { %s2246_s28 = scalar_lea.vmem %s2245_s22, 4096  ;;  %p2247_p1 = scmp.lt.s32.totalorder %s2593_s13, %s2245_s22 }
  0x82   : > { %p2242_p12 = pnand %p2240_p9, %p2492_p3  ;;  %p2248_p11 = scmp.lt.s32.totalorder %s2246_s28, %s2239_s17 }
  0x84   : > { %p2243_p0 = pneg %p2242_p12  ;;  %p2249_p5 = por %p2248_p11, %p2247_p1 }
  0x86   : > { %p2250_p7 = pnand %p2249_p5, %p2243_p0 }
  0x88   : > { %2253 = shalt.err (!%p2250_p7)
}
  0x89   : > { %1999 = dma.hbm_to_vmem [thread:$0]  (!%p2470_p13), %s2590_s10, 2048, %s2593_s13, %s440_s30, %s3749_s23, %s3748_s26, %s3747_s8  }
  0x8a   : > { %p3750_p3 = scmp.ne.s32.totalorder %s3745_s15, 0 }
  0x8c   : > { %462 = sbr.rel (%p3750_p3) target bundleno = 1007 (0x3ef), region = 68 }
  0x91   : > { %s2622_s16 = sand.u32 1, %s2318_s24   ;;  %p3751_p8 = scmp.ne.s32.totalorder %s3735_s14, 0 }
  0x92   : > { %s1951_s0 = sshll.u32 %s2622_s16, 7  ;;  %s465_s6 = scalar_lea.sflag [#allocation4], %s2622_s16 }
  0x93   : > { %s2626_s27 = scalar_lea.vmem [#allocation3], %s1951_s0 }
  0x94   : > { %2297 = dma.done.wait (%p3751_p8), %s465_s6, 2048  }
  0x95   : > { %2299 = vsyncadd (%p3751_p8), %s465_s6, 4294965248  ;;  %s473_s20 = sand.u32 1, %s2428_s11   ;;  %s2633_s8 = scalar_lea.vmem [#allocation6], %s1951_s0 }
  0x96   : > { %s474_s15 = scalar_lea.sflag [#allocation7], %s473_s20 }
  0x97   : > { %2301 = dma.done.wait (%p3751_p8), %s474_s15, 4096  }
  0x98   : > { %2303 = vsyncadd (%p3751_p8), %s474_s15, 4294963200  ;;  %s2639_s26 = scalar_lea.vmem [#allocation8], %s1951_s0  ;;  %s492_s23 = scalar_lea.sflag [#allocation10], %s2622_s16 }
  0x99   : > { %s2642_s10 = scalar_lea.vmem [#allocation9], %s1951_s0 }
  0x9a   : > { %2305 = dma.done.wait (%p3751_p8), %s492_s23, 2048  }
  0x9b   : > { %2307 = vsyncadd (%p3751_p8), %s492_s23, 4294965248  ;;  %v2335_v1 = vmov 0   ;;  %v1340_v2 = vld [vmem:[%s3675_s4] sm:$0xf]  ;;  %v1398_v4 = vld [vmem:[%s3678_s7 + $0x8] sm:$0xff]  ;;  %s3799_s13 = sld [smem:[#allocation43_spill]] }
  0x9c   : > { %2044 = vset.pattern.permute.xlu0 %v2335_v1  ;;  %2045 = vset.pattern.permute.xlu1 %v2335_v1  ;;  %v1367_v3 = vld [vmem:[%s3676_s5] sm:$0xf]  ;;  %v1545_v5 = vld [vmem:[%s3680_s9 + $0x18] sm:$0xff]  ;;  %v1543_v6 = vld [vmem:[%s3680_s9 + $0x8] sm:$0xff]  ;;  %s3800_s17 = sld [smem:[#allocation44_spill]]  ;;  %s1785_s18 = scalar_lea.sflag [#allocation5], %s2622_s16 }
  0x9d   : > { %1343 = vperm.xlu0 %2044, %v1340_v2   ;;  %v1677_v7 = vld [vmem:[#allocation2] sm:$0x1]  ;;  %v556_v8 = vld [vmem:[%s2626_s27] sm:$0xff]  ;;  %v558_v9 = vld [vmem:[%s2626_s27 + $0x10] sm:$0xff]  ;;  %s3802_s23 = sld [smem:[#allocation21_spill]]  ;;  %s2338_s22 = smov [#allocation11]  }
  0x9e   : > { %v2666_v10 = vld [vmem:[%s2633_s8] sm:$0xff]  ;;  %v2669_v11 = vld [vmem:[%s2633_s8 + $0x10] sm:$0xff]  ;;  %v557_v12 = vld [vmem:[%s2626_s27 + $0x8] sm:$0xff]  ;;  %v660_v19 = vmul.f32 %v556_v8, %v556_v8  ;;  %v662_v20 = vmul.f32 %v558_v9, %v558_v9  ;;  %s3803_s25 = sld [smem:[#allocation46_spill]]  ;;  %s2258_s28 = sshll.u32 %s2338_s22, 4  ;;  %s2259_s28 = int_to_ptr.vmem [resolvable:$false] %s2258_s28 }
  0x9f   : > { %v559_v13 = vld [vmem:[%s2626_s27 + $0x18] sm:$0xff]  ;;  %v588_v14 = vmul.f32 %v2666_v10, %v556_v8  ;;  %v590_v15 = vmul.f32 %v2669_v11, %v558_v9  ;;  %v560_v16 = vld [vmem:[%s2626_s27 + $0x20] sm:$0xff]  ;;  %v2677_v17 = vld [vmem:[%s2633_s8 + $0x8] sm:$0xff]  ;;  %v661_v29 = vmul.f32 %v557_v12, %v557_v12 }
  0xa0   : > { %v2680_v18 = vld [vmem:[%s2633_s8 + $0x18] sm:$0xff]  ;;  %v561_v21 = vld [vmem:[%s2626_s27 + $0x28] sm:$0xff]  ;;  %v562_v22 = vld [vmem:[%s2626_s27 + $0x30] sm:$0xff]  ;;  %v589_v24 = vmul.f32 %v2677_v17, %v557_v12  ;;  %v663_v36 = vmul.f32 %v559_v13, %v559_v13  ;;  %v664_v40 = vmul.f32 %v560_v16, %v560_v16  ;;  %v676_v43 = vadd.f32 %v662_v20, %v660_v19 }
  0xa1   : > { %1370 = vperm.xlu0 %2044, %v1367_v3   ;;  %v563_v23 = vld [vmem:[%s2626_s27 + $0x38] sm:$0xff]  ;;  %v591_v25 = vmul.f32 %v2680_v18, %v559_v13  ;;  %v564_v26 = vld [vmem:[%s2626_s27 + $0x40] sm:$0xff]  ;;  %v2692_v28 = vld [vmem:[%s2633_s8 + $0x30] sm:$0xff]  ;;  %v604_v35 = vadd.f32 %v590_v15, %v588_v14  ;;  %v665_v41 = vmul.f32 %v561_v21, %v561_v21  ;;  %v666_v42 = vmul.f32 %v562_v22, %v562_v22 }
  0xa2   : > { %v2689_v27 = vld [vmem:[%s2633_s8 + $0x20] sm:$0xff]  ;;  %v565_v30 = vld [vmem:[%s2626_s27 + $0x48] sm:$0xff]  ;;  %v566_v31 = vld [vmem:[%s2626_s27 + $0x50] sm:$0xff]  ;;  %v594_v34 = vmul.f32 %v2692_v28, %v562_v22  ;;  %v667_v50 = vmul.f32 %v563_v23, %v563_v23  ;;  %v668_v62 = vmul.f32 %v564_v26, %v564_v26 }
  0xa3   : > { %v567_v32 = vld [vmem:[%s2626_s27 + $0x58] sm:$0xff]  ;;  %v592_v33 = vmul.f32 %v2689_v27, %v560_v16  ;;  %v2700_v37 = vld [vmem:[%s2633_s8 + $0x28] sm:$0xff]  ;;  %v2706_v39 = vld [vmem:[%s2633_s8 + $0x40] sm:$0xff]  ;;  %v611_v49 = vadd.f32 %v591_v25, %v589_v24  ;;  %v605_v60 = vrot.slane %v604_v35, 4  ;;  %v669_v63 = vmul.f32 %v565_v30, %v565_v30  ;;  %p3805_p10 = scmp.ne.s32.totalorder %s3802_s23, 0 }
  0xa4   : > { %v2703_v38 = vld [vmem:[%s2633_s8 + $0x38] sm:$0xff]  ;;  %v2709_v44 = vld [vmem:[%s2633_s8 + $0x48] sm:$0xff]  ;;  %v2712_v45 = vld [vmem:[%s2633_s8 + $0x50] sm:$0xff]  ;;  %v593_v47 = vmul.f32 %v2700_v37, %v561_v21  ;;  %v596_v53 = vmul.f32 %v2706_v39, %v564_v26  ;;  %v670_v15 = vmul.f32 %v566_v31, %v566_v31  ;;  %v671_v16 = vmul.f32 %v567_v32, %v567_v32  ;;  %s3804_s29 = smov %s3803_s25 }
  0xa5   : > { %1408 = vperm.xlu0 %2044, %v1398_v4   ;;  %v2715_v46 = vld [vmem:[%s2633_s8 + $0x58] sm:$0xff]  ;;  %v595_v48 = vmul.f32 %v2703_v38, %v563_v23  ;;  %v568_v51 = vld [vmem:[%s2626_s27 + $0x60] sm:$0xff]  ;;  %v569_v52 = vld [vmem:[%s2626_s27 + $0x68] sm:$0xff]  ;;  %v597_v54 = vmul.f32 %v2709_v44, %v565_v30  ;;  %v598_v55 = vmul.f32 %v2712_v45, %v566_v31  ;;  %v618_v61 = vadd.f32 %v594_v34, %v592_v33 }
  0xa6   : > { %v599_v56 = vmul.f32 %v2715_v46, %v567_v32  ;;  %v570_v57 = vld [vmem:[%s2626_s27 + $0x70] sm:$0xff]  ;;  %v2727_v58 = vld [vmem:[%s2633_s8 + $0x60] sm:$0xff]  ;;  %v2730_v59 = vld [vmem:[%s2633_s8 + $0x68] sm:$0xff]  ;;  %v612_v9 = vrot.slane %v611_v49, 4  ;;  %v606_v19 = vadd.f32 %v605_v60, %v604_v35  ;;  %v672_v21 = vmul.f32 %v568_v51, %v568_v51 }
  0xa7   : > { %3752 = vst [vmem:[#allocation23_spill] sm:$0xff] %v2730_v59  ;;  %v571_v0 = vld [vmem:[%s2626_s27 + $0x78] sm:$0xff]  ;;  %v2734_v1 = vld [vmem:[%s2633_s8 + $0x70] sm:$0xff]  ;;  %v600_v3 = vmul.f32 %v2727_v58, %v568_v51  ;;  %v601_v4 = vmul.f32 %v2730_v59, %v569_v52  ;;  %v625_v12 = vadd.f32 %v595_v48, %v593_v47  ;;  %v632_v13 = vadd.f32 %v598_v55, %v596_v53 }
  0xa8   : > { %v2737_v2 = vld [vmem:[%s2633_s8 + $0x78] sm:$0xff]  ;;  %v639_v14 = vadd.f32 %v599_v56, %v597_v54  ;;  %v619_v20 = vrot.slane %v618_v61, 4  ;;  %v673_v22 = vmul.f32 %v569_v52, %v569_v52  ;;  %v674_v23 = vmul.f32 %v570_v57, %v570_v57  ;;  %s3801_s8 = sld [smem:[#allocation45_spill]] }
  0xa9   : > { %1563 = vperm.xlu0 %2044, %v1545_v5   ;;  %3753 = vst [vmem:[#allocation24_spill] sm:$0xff] %v2737_v2  ;;  %v677_v5 = vrot.slane %v676_v43, 4  ;;  %v603_v8 = vmul.f32 %v2737_v2, %v571_v0  ;;  %v690_v26 = vadd.f32 %v666_v42, %v664_v40  ;;  %v613_v30 = vadd.f32 %v612_v9, %v611_v49 }
  0xaa   : > { %v640_v2 = vrot.slane %v639_v14, 4  ;;  %v675_v59 = vmul.f32 %v571_v0, %v571_v0  ;;  %v697_v47 = vadd.f32 %v667_v50, %v665_v41  ;;  %v607_v48 = vrot.slane %v606_v19, 2 }
  0xab   : > { %v678_v24 = vadd.f32 %v677_v5, %v676_v43  ;;  %v653_v34 = vadd.f32 %v603_v8, %v601_v4  ;;  %v2743_v53 = vadd.f32 %v619_v20, %v618_v61  ;;  %v704_v31 = vadd.f32 %v670_v15, %v668_v62 }
  0xac   : > { %v711_v32 = vadd.f32 %v671_v16, %v669_v63  ;;  %v691_v52 = vrot.slane %v690_v26, 4  ;;  %v718_v54 = vadd.f32 %v674_v23, %v672_v21  ;;  %v614_v43 = vrot.slane %v613_v30, 2 }
  0xad   : > { %1553 = vperm.xlu0 %2044, %v1543_v6   ;;  %v683_v6 = vadd.f32 %v663_v36, %v661_v29  ;;  %v626_v29 = vrot.slane %v625_v12, 4  ;;  %v633_v36 = vrot.slane %v632_v13, 4  ;;  %v679_v35 = vrot.slane %v678_v24, 2 }
  0xae   : > { %v654_v42 = vrot.slane %v653_v34, 4  ;;  %v2749_v56 = vadd.f32 %v640_v2, %v639_v14  ;;  %v725_v41 = vadd.f32 %v675_v59, %v673_v22  ;;  %v2751_v50 = vadd.f32 %v607_v48, %v606_v19 }
  0xaf   : > { %v684_v25 = vrot.slane %v683_v6, 4  ;;  %v2745_v55 = vadd.f32 %v626_v29, %v625_v12  ;;  %v2747_v49 = vadd.f32 %v633_v36, %v632_v13  ;;  %v621_v60 = vrot.slane %v2743_v53, 2 }
  0xb0   : > { %v705_v61 = vrot.slane %v704_v31, 4  ;;  %v712_v62 = vrot.slane %v711_v32, 4  ;;  %v680_v63 = vadd.f32 %v679_v35, %v678_v24  ;;  %v719_v4 = vrot.slane %v718_v54, 4 }
  0xb1   : > { %1680 = vperm.xlu0 %2044, %v1677_v7   ;;  %v602_v7 = vmul.f32 %v2734_v1, %v570_v57  ;;  %v685_v51 = vadd.f32 %v684_v25, %v683_v6  ;;  %v698_v57 = vrot.slane %v697_v47, 4  ;;  %v788_v5 = vmul.f32 %v2666_v10, %v2666_v10 }
  0xb2   : > { %v789_v6 = vmul.f32 %v2677_v17, %v2677_v17  ;;  %v790_v2 = vmul.f32 %v2669_v11, %v2669_v11  ;;  %v791_v59 = vmul.f32 %v2680_v18, %v2680_v18  ;;  %v2764_v8 = vadd.f32 %v654_v42, %v653_v34 }
  0xb3   : > { %v646_v33 = vadd.f32 %v602_v7, %v600_v3  ;;  %v686_v0 = vrot.slane %v685_v51, 2  ;;  %v692_v3 = vadd.f32 %v691_v52, %v690_v26  ;;  %v699_v9 = vadd.f32 %v698_v57, %v697_v47 }
  0xb4   : > { %v726_v12 = vrot.slane %v725_v41, 4  ;;  %v2766_v13 = vadd.f32 %v614_v43, %v613_v30  ;;  %v628_v14 = vrot.slane %v2745_v55, 2  ;;  %v706_v10 = vadd.f32 %v705_v61, %v704_v31 }
  0xb5   : > { %v647_v40 = vrot.slane %v646_v33, 4  ;;  %v713_v15 = vadd.f32 %v712_v62, %v711_v32  ;;  %v681_v16 = vrot.slane %v680_v63, 1  ;;  %v687_v17 = vadd.f32 %v686_v0, %v685_v51 }
  0xb6   : > { %v693_v19 = vrot.slane %v692_v3, 2  ;;  %v720_v20 = vadd.f32 %v719_v4, %v718_v54  ;;  %v792_v11 = vmul.f32 %v2689_v27, %v2689_v27  ;;  %v794_v18 = vmul.f32 %v2692_v28, %v2692_v28 }
  0xb7   : > { %v2762_v7 = vadd.f32 %v647_v40, %v646_v33  ;;  %v804_v21 = vadd.f32 %v790_v2, %v788_v5  ;;  %v811_v22 = vadd.f32 %v791_v59, %v789_v6  ;;  %v700_v23 = vrot.slane %v699_v9, 2 }
  0xb8   : > { %v727_v24 = vadd.f32 %v726_v12, %v725_v41  ;;  %v793_v25 = vmul.f32 %v2700_v37, %v2700_v37  ;;  %v795_v26 = vmul.f32 %v2703_v38, %v2703_v38  ;;  %v635_v30 = vrot.slane %v2747_v49, 2 }
  0xb9   : > { %v707_v29 = vrot.slane %v706_v10, 2  ;;  %v714_v33 = vrot.slane %v713_v15, 2  ;;  %v805_v34 = vrot.slane %v804_v21, 4  ;;  %v688_v36 = vrot.slane %v687_v17, 1 }
  0xba   : > { %v694_v27 = vadd.f32 %v693_v19, %v692_v3  ;;  %v721_v47 = vrot.slane %v720_v20, 2  ;;  %v796_v28 = vmul.f32 %v2706_v39, %v2706_v39  ;;  %v798_v48 = vmul.f32 %v2712_v45, %v2712_v45 }
  0xbb   : > { %v806_v31 = vadd.f32 %v805_v34, %v804_v21  ;;  %v812_v32 = vrot.slane %v811_v22, 4  ;;  %v818_v37 = vadd.f32 %v794_v18, %v792_v11  ;;  %v2782_v35 = vadd.f32 %v681_v16, %v680_v63  ;;  %v3755_v18 = vld [vmem:[#allocation23_spill] sm:$0xff]  ;;  %v3756_v21 = vld [vmem:[#allocation24_spill] sm:$0xff] }
  0xbc   : > { %v701_v38 = vadd.f32 %v700_v23, %v699_v9  ;;  %v728_v51 = vrot.slane %v727_v24, 2  ;;  %v825_v52 = vadd.f32 %v795_v26, %v793_v25  ;;  %v609_v54 = vrot.slane %v2751_v50, 1 }
  0xbd   : > { %v642_v43 = vrot.slane %v2749_v56, 2  ;;  %v708_v40 = vadd.f32 %v707_v29, %v706_v10  ;;  %v715_v42 = vadd.f32 %v714_v33, %v713_v15  ;;  %v2787_v57 = vadd.f32 %v621_v60, %v2743_v53 }
  0xbe   : > { %v2789_v39 = vadd.f32 %v688_v36, %v687_v17  ;;  %v722_v45 = vadd.f32 %v721_v47, %v720_v20  ;;  %v807_v41 = vrot.slane %v806_v31, 2  ;;  %v695_v61 = vrot.slane %v694_v27, 1 }
  0xbf   : > { %3754 = vst [vmem:[#allocation25_spill] sm:$0xff] %v2787_v57  ;;  %v813_v62 = vadd.f32 %v812_v32, %v811_v22  ;;  %v819_v63 = vrot.slane %v818_v37, 4  ;;  %v832_v0 = vadd.f32 %v798_v48, %v796_v28  ;;  %v702_v3 = vrot.slane %v701_v38, 1 }
  0xc0   : > { %v729_v4 = vadd.f32 %v728_v51, %v727_v24  ;;  %2046 = vrsqrt.f32 %v2782_v35  ;;  %v826_v5 = vrot.slane %v825_v52, 4  ;;  %v709_v6 = vrot.slane %v708_v40, 1 }
  0xc1   : > { %v716_v2 = vrot.slane %v715_v42, 1  ;;  %v797_v59 = vmul.f32 %v2709_v44, %v2709_v44  ;;  %v799_v53 = vmul.f32 %v2715_v46, %v2715_v46  ;;  %v723_v60 = vrot.slane %v722_v45, 1 }
  0xc2   : > { %v800_v9 = vmul.f32 %v2727_v58, %v2727_v58  ;;  %v802_v12 = vmul.f32 %v2734_v1, %v2734_v1  ;;  %v808_v10 = vadd.f32 %v807_v41, %v806_v31  ;;  %v2800_v15 = vadd.f32 %v695_v61, %v694_v27 }
  0xc3   : > { %v814_v16 = vrot.slane %v813_v62, 2  ;;  %v820_v17 = vadd.f32 %v819_v63, %v818_v37  ;;  %v833_v19 = vrot.slane %v832_v0, 4  ;;  %v2802_v20 = vadd.f32 %v702_v3, %v701_v38 }
  0xc4   : > { %v730_v11 = vrot.slane %v729_v4, 1  ;;  %2048 = vrsqrt.f32 %v2789_v39  ;;  %v827_v44 = vadd.f32 %v826_v5, %v825_v52  ;;  %v2805_v46 = vadd.f32 %v709_v6, %v708_v40 }
  0xc5   : > { %v801_v58 = vmul.f32 %v3755_v18, %v3755_v18  ;;  %v803_v1 = vmul.f32 %v3756_v21, %v3756_v21  ;;  %v839_v22 = vadd.f32 %v799_v53, %v797_v59  ;;  %v2811_v23 = vadd.f32 %v716_v2, %v715_v42 }
  0xc6   : > { %v2813_v24 = vadd.f32 %v723_v60, %v722_v45  ;;  %v809_v25 = vrot.slane %v808_v10, 1  ;;  %v846_v26 = vadd.f32 %v802_v12, %v800_v9  ;;  %2050 = vrsqrt.f32 %v2800_v15 }
  0xc7   : > { %v815_v29 = vadd.f32 %v814_v16, %v813_v62  ;;  %v821_v33 = vrot.slane %v820_v17, 2  ;;  %v834_v34 = vadd.f32 %v833_v19, %v832_v0  ;;  %v649_v36 = vrot.slane %v2762_v7, 2  ;;  %v3095_v0 = vld [vmem:[%s2639_s26 + $0x68] sm:$0xff] }
  0xc8   : > { %v2817_v27 = vadd.f32 %v730_v11, %v729_v4  ;;  %2052 = vrsqrt.f32 %v2802_v20  ;;  %v828_v47 = vrot.slane %v827_v44, 2  ;;  %v656_v28 = vrot.slane %v2764_v8, 2 }
  0xc9   : > { %2054 = vrsqrt.f32 %v2805_v46  ;;  %v840_v48 = vrot.slane %v839_v22, 4  ;;  %v853_v31 = vadd.f32 %v803_v1, %v801_v58  ;;  %v616_v32 = vrot.slane %v2766_v13, 1 }
  0xca   : > { %2056 = vrsqrt.f32 %v2811_v23  ;;  %v2824_v37 = vadd.f32 %v809_v25, %v808_v10  ;;  %v847_v38 = vrot.slane %v846_v26, 4  ;;  %v816_v51 = vrot.slane %v815_v29, 1 }
  0xcb   : > { %2058 = vrsqrt.f32 %v2813_v24  ;;  %v822_v52 = vadd.f32 %v821_v33, %v820_v17  ;;  %v835_v40 = vrot.slane %v834_v34, 2  ;;  %v2830_v42 = vadd.f32 %v628_v14, %v2745_v55 }
  0xcc   : > { %v2835_v45 = vadd.f32 %v635_v30, %v2747_v49  ;;  %2060 = vrsqrt.f32 %v2817_v27  ;;  %v829_v41 = vadd.f32 %v828_v47, %v827_v44  ;;  %v2841_v62 = vadd.f32 %v609_v54, %v2751_v50 }
  0xcd   : > { %3757 = vst [vmem:[#allocation23_spill] sm:$0xff] %v2830_v42  ;;  %v2047_v61 = vpop.eup %2046  ;;  %v2846_v63 = vadd.f32 %v642_v43, %v2749_v56  ;;  %v841_v55 = vadd.f32 %v840_v48, %v839_v22  ;;  %v854_v14 = vrot.slane %v853_v31, 4  ;;  %v2850_v49 = vadd.f32 %v649_v36, %v2762_v7  ;;  %v3131_v42 = vld [vmem:[%s2642_s10 + $0x68] sm:$0xff] }
  0xce   : > { %3758 = vst [vmem:[#allocation24_spill] sm:$0xff] %v2835_v45  ;;  %3759 = vst [vmem:[#allocation26_spill] sm:$0xff] %v2841_v62  ;;  %v848_v30 = vadd.f32 %v847_v38, %v846_v26  ;;  %2062 = vrsqrt.f32 %v2824_v37  ;;  %v2854_v3 = vadd.f32 %v656_v28, %v2764_v8  ;;  %v2856_v50 = vadd.f32 %v816_v51, %v815_v29 }
  0xcf   : > { %3760 = vst [vmem:[#allocation27_spill] sm:$0xff] %v2846_v63  ;;  %3761 = vst [vmem:[#allocation28_spill] sm:$0xff] %v2850_v49  ;;  %v823_v54 = vrot.slane %v822_v52, 1  ;;  %v836_v4 = vadd.f32 %v835_v40, %v834_v34  ;;  %v2859_v56 = vadd.f32 %v616_v32, %v2766_v13  ;;  %v830_v6 = vrot.slane %v829_v41, 1  ;;  %v962_v49 = vld [vmem:[%s2639_s26 + $0x70] sm:$0xff] }
  0xd0   : > { %3762 = vst [vmem:[#allocation29_spill] sm:$0xff] %v2854_v3  ;;  %vm734_vm0 = vcmp.eq.f32.partialorder %v2782_v35, inf  ;;  %v737_v2 = vand.u32 2147483648, %v2782_v35  ;;  %v842_v59 = vrot.slane %v841_v55, 2  ;;  %v855_v8 = vadd.f32 %v854_v14, %v853_v31  ;;  %3771 = vst [vmem:[#allocation38_spill] sm:$0xff] %v3131_v42  ;;  %v3134_v63 = vld [vmem:[%s2642_s10 + $0x70] sm:$0xff] }
  0xd1   : > { %3763 = vst [vmem:[#allocation30_spill] sm:$0xff] %v2859_v56  ;;  %v2049_v7 = vpop.eup %2048  ;;  %vm741_vm1 = vcmp.eq.f32.partialorder %v2789_v39, inf  ;;  %v744_v53 = vand.u32 2147483648, %v2789_v39  ;;  %vm748_vm2 = vcmp.eq.f32.partialorder %v2800_v15, inf  ;;  %v849_v13 = vrot.slane %v848_v30, 2  ;;  %v3114_v56 = vld [vmem:[%s2642_s10 + $0x60] sm:$0xff] }
  0xd2   : > { %vm736_vm3 = vcmp.eq.f32.partialorder %v2782_v35, 0.0  ;;  %v751_v60 = vand.u32 2147483648, %v2800_v15  ;;  %v2870_v9 = vadd.f32 %v823_v54, %v822_v52  ;;  %v837_v12 = vrot.slane %v836_v4, 1  ;;  %3770 = vst [vmem:[#allocation37_spill] sm:$0xff] %v3114_v56  ;;  %3772 = vst [vmem:[#allocation39_spill] sm:$0xff] %v3134_v63 }
  0xd3   : > { %2064 = vrsqrt.f32 %v2856_v50  ;;  %v2051_v10 = vpop.eup %2050  ;;  %vm743_vm4 = vcmp.eq.f32.partialorder %v2789_v39, 0.0  ;;  %vm750_vm5 = vcmp.eq.f32.partialorder %v2800_v15, 0.0  ;;  %vm755_vm6 = vcmp.eq.f32.partialorder %v2802_v20, inf }
  0xd4   : > { %vm757_vm7 = vcmp.eq.f32.partialorder %v2802_v20, 0.0  ;;  %v758_v16 = vand.u32 2147483648, %v2802_v20  ;;  %v2878_v17 = vadd.f32 %v830_v6, %v829_v41  ;;  %vm762_vm8 = vcmp.eq.f32.partialorder %v2805_v46, inf }
  0xd5   : > { %v2053_v19 = vpop.eup %2052  ;;  %vm764_vm9 = vcmp.eq.f32.partialorder %v2805_v46, 0.0  ;;  %v843_v11 = vadd.f32 %v842_v59, %v841_v55  ;;  %v856_v44 = vrot.slane %v855_v8, 2  ;;  %v733_v58 = vmul.f32 %v2047_v61, %v2782_v35 }
  0xd6   : > { %v2055_v18 = vpop.eup %2054  ;;  %v765_v21 = vand.u32 2147483648, %v2805_v46  ;;  %vm769_vm10 = vcmp.eq.f32.partialorder %v2811_v23, inf  ;;  %v850_v1 = vadd.f32 %v849_v13, %v848_v30  ;;  %v740_v25 = vmul.f32 %v2049_v7, %v2789_v39 }
  0xd7   : > { %v2057_v22 = vpop.eup %2056  ;;  %v747_v26 = vmul.f32 %v2051_v10, %v2800_v15  ;;  %v2887_v29 = vadd.f32 %v837_v12, %v836_v4  ;;  %2066 = vrsqrt.f32 %v2870_v9  ;;  %v754_v34 = vmul.f32 %v2053_v19, %v2802_v20 }
  0xd8   : > { %v2059_v33 = vpop.eup %2058  ;;  %vm771_vm11 = vcmp.eq.f32.partialorder %v2811_v23, 0.0  ;;  %v772_v36 = vand.u32 2147483648, %v2811_v23  ;;  %2068 = vrsqrt.f32 %v2878_v17  ;;  %v761_v28 = vmul.f32 %v2055_v18, %v2805_v46 }
  0xd9   : > { %v2061_v47 = vpop.eup %2060  ;;  %vm776_vm12 = vcmp.eq.f32.partialorder %v2813_v24, inf  ;;  %v844_v48 = vrot.slane %v843_v11, 1  ;;  %v857_v31 = vadd.f32 %v856_v44, %v855_v8  ;;  %vm778_vm13 = vcmp.eq.f32.partialorder %v2813_v24, 0.0  ;;  %v2968_v44 = vld [vmem:[%s2642_s10 + $0x10] sm:$0xff] }
  0xda   : > { %v779_v32 = vand.u32 2147483648, %v2813_v24  ;;  %vm783_vm14 = vcmp.eq.f32.partialorder %v2817_v27, inf  ;;  %v851_v38 = vrot.slane %v850_v1, 1  ;;  %v735_v52 = vsel %vm734_vm0, %v2782_v35, %v733_v58 }
  0xdb   : > { %v2063_v51 = vpop.eup %2062  ;;  %v742_v40 = vsel %vm741_vm1, %v2789_v39, %v740_v25  ;;  %v749_v41 = vsel %vm748_vm2, %v2800_v15, %v747_v26  ;;  %2070 = vrsqrt.f32 %v2887_v29  ;;  %v756_v61 = vsel %vm755_vm6, %v2802_v20, %v754_v34  ;;  %v2993_v34 = vld [vmem:[%s2639_s26 + $0x18] sm:$0xff] }
  0xdc   : > { %v768_v55 = vmul.f32 %v2057_v22, %v2811_v23  ;;  %v775_v14 = vmul.f32 %v2059_v33, %v2813_v24  ;;  %v782_v30 = vmul.f32 %v2061_v47, %v2817_v27  ;;  %v763_v54 = vsel %vm762_vm8, %v2805_v46, %v761_v28  ;;  %v2990_v33 = vld [vmem:[%s2639_s26 + $0x8] sm:$0xff] }
  0xdd   : > { %vm785_vm15 = vcmp.eq.f32.partialorder %v2817_v27, 0.0  ;;  %v2919_v4 = vadd.f32 %v844_v48, %v843_v11  ;;  %v858_v6 = vrot.slane %v857_v31, 1  ;;  %v738_v7 = vsel %vm736_vm3, %v737_v2, %v735_v52  ;;  %v2965_v11 = vld [vmem:[%s2642_s10] sm:$0xff] }
  0xde   : > { %v786_v59 = vand.u32 2147483648, %v2817_v27  ;;  %v2924_v8 = vadd.f32 %v851_v38, %v850_v1  ;;  %v861_v13 = vmul.f32 %v2063_v51, %v2824_v37  ;;  %v2929_v12 = vsel %vm743_vm4, %v744_v53, %v742_v40  ;;  %v2954_v53 = vld [vmem:[%s2639_s26] sm:$0xff]  ;;  %v1400_v40 = vld [vmem:[%s3678_s7 + $0x18] sm:$0xff] }
  0xdf   : > { %v2933_v10 = vsel %vm750_vm5, %v751_v60, %v749_v41  ;;  %v2937_v35 = vsel %vm757_vm7, %v758_v16, %v756_v61  ;;  %vm862_vm0 = vcmp.eq.f32.partialorder %v2824_v37, inf  ;;  %v2942_v19 = vsel %vm764_vm9, %v765_v21, %v763_v54  ;;  %v2962_v16 = vld [vmem:[%s2639_s26 + $0x10] sm:$0xff]  ;;  %1418 = vperm.xlu1 %2045, %v1400_v40   ;;  %v3084_v40 = vld [vmem:[%s2642_s10 + $0x40] sm:$0xff] }
  0xe0   : > { %v2065_v2 = vpop.eup %2064  ;;  %v770_v39 = vsel %vm769_vm10, %v2811_v23, %v768_v55  ;;  %v777_v15 = vsel %vm776_vm12, %v2813_v24, %v775_v14  ;;  %v784_v20 = vsel %vm783_vm14, %v2817_v27, %v782_v30  ;;  %v2956_v60 = vadd.f32 %v858_v6, %v857_v31  ;;  %v3000_v24 = vld [vmem:[%s2642_s10 + $0x8] sm:$0xff]  ;;  %v3003_v27 = vld [vmem:[%s2642_s10 + $0x18] sm:$0xff]  ;;  %v3028_v14 = vld [vmem:[%s2639_s26 + $0x20] sm:$0xff]  ;;  %3766 = vst [vmem:[#allocation33_spill] sm:$0xff] %v3084_v40 }
  0xe1   : > { %vm864_vm1 = vcmp.eq.f32.partialorder %v2824_v37, 0.0  ;;  %v865_v46 = vand.u32 2147483648, %v2824_v37  ;;  %2072 = vrsqrt.f32 %v2919_v4  ;;  %v863_v18 = vsel %vm862_vm0, %v2824_v37, %v861_v13  ;;  %v3031_v30 = vld [vmem:[%s2639_s26 + $0x28] sm:$0xff]  ;;  %v3034_v54 = vld [vmem:[%s2639_s26 + $0x30] sm:$0xff] }
  0xe2   : > { %2074 = vrsqrt.f32 %v2924_v8  ;;  %v980_v58 = vmul.f32 %v2965_v11, %v2954_v53  ;;  %v982_v21 = vmul.f32 %v2968_v44, %v2962_v16  ;;  %v2978_v1 = vsel %vm771_vm11, %v772_v36, %v770_v39  ;;  %v3046_v39 = vld [vmem:[%s2642_s10 + $0x20] sm:$0xff]  ;;  %v3101_v13 = vld [vmem:[%s2642_s10 + $0x50] sm:$0xff] }
  0xe3   : > { %v2982_v22 = vsel %vm778_vm13, %v779_v32, %v777_v15  ;;  %v2986_v25 = vsel %vm785_vm15, %v786_v59, %v784_v20  ;;  %v868_v26 = vmul.f32 %v2065_v2, %v2856_v50  ;;  %vm869_vm2 = vcmp.eq.f32.partialorder %v2856_v50, inf  ;;  %v3040_v2 = vld [vmem:[%s2639_s26 + $0x38] sm:$0xff]  ;;  %v1399_v20 = vld [vmem:[%s3678_s7 + $0x10] sm:$0xff]  ;;  %3768 = vst [vmem:[#allocation35_spill] sm:$0xff] %v3101_v13 }
  0xe4   : > { %v2067_v47 = vpop.eup %2066  ;;  %vm871_vm3 = vcmp.eq.f32.partialorder %v2856_v50, 0.0  ;;  %v872_v23 = vand.u32 2147483648, %v2856_v50  ;;  %vm876_vm4 = vcmp.eq.f32.partialorder %v2870_v9, inf  ;;  %v866_v28 = vsel %vm864_vm1, %v865_v46, %v863_v18  ;;  %v3098_v18 = vld [vmem:[%s2642_s10 + $0x48] sm:$0xff]  ;;  %1413 = vperm.xlu1 %2045, %v1399_v20   ;;  %v1397_v20 = vld [vmem:[%s3678_s7] sm:$0xff] }
  0xe5   : > { %v2069_v36 = vpop.eup %2068  ;;  %vm878_vm5 = vcmp.eq.f32.partialorder %v2870_v9, 0.0  ;;  %v981_v48 = vmul.f32 %v3000_v24, %v2990_v33  ;;  %v983_v31 = vmul.f32 %v3003_v27, %v2993_v34  ;;  %v879_v32 = vand.u32 2147483648, %v2870_v9  ;;  %3767 = vst [vmem:[#allocation34_spill] sm:$0xff] %v3098_v18 }
  0xe6   : > { %vm883_vm6 = vcmp.eq.f32.partialorder %v2878_v17, inf  ;;  %2076 = vrsqrt.f32 %v2956_v60  ;;  %v3015_v38 = vadd.f32 %v982_v21, %v980_v58  ;;  %v870_v37 = vsel %vm869_vm2, %v2856_v50, %v868_v26  ;;  %v3055_v58 = vld [vmem:[%s2639_s26 + $0x48] sm:$0xff]  ;;  %v3058_v21 = vld [vmem:[%s2639_s26 + $0x50] sm:$0xff] }
  0xe7   : > { %v875_v51 = vmul.f32 %v2067_v47, %v2870_v9  ;;  %vm885_vm7 = vcmp.eq.f32.partialorder %v2878_v17, 0.0  ;;  %v886_v52 = vand.u32 2147483648, %v2878_v17  ;;  %v882_v61 = vmul.f32 %v2069_v36, %v2878_v17  ;;  %v3061_v26 = vld [vmem:[%s2642_s10 + $0x28] sm:$0xff]  ;;  %v3064_v47 = vld [vmem:[%s2642_s10 + $0x30] sm:$0xff] }
  0xe8   : > { %v2071_v41 = vpop.eup %2070  ;;  %vm890_vm8 = vcmp.eq.f32.partialorder %v2887_v29, inf  ;;  %vm892_vm9 = vcmp.eq.f32.partialorder %v2887_v29, 0.0  ;;  %v916_v55 = vmul.f32 %v866_v28, %v738_v7  ;;  %v3043_v7 = vld [vmem:[%s2639_s26 + $0x40] sm:$0xff]  ;;  %v1003_v15 = vadd.f32 %v983_v31, %v981_v48  ;;  %3764 = vst [vmem:[#allocation31_spill] sm:$0xff] %v3064_v47  ;;  %v3075_v48 = vld [vmem:[%s2639_s26 + $0x58] sm:$0xff]  ;;  %1403 = vperm.xlu1 %2045, %v1397_v20  }
  0xe9   : > { %v873_v46 = vsel %vm871_vm3, %v872_v23, %v870_v37  ;;  %v984_v36 = vmul.f32 %v3046_v39, %v3028_v14  ;;  %v997_v28 = vrot.slane %v3015_v38, 4  ;;  %v877_v50 = vsel %vm876_vm4, %v2870_v9, %v875_v51  ;;  %v3078_v31 = vld [vmem:[%s2639_s26 + $0x60] sm:$0xff]  ;;  %v3081_v37 = vld [vmem:[%s2642_s10 + $0x38] sm:$0xff] }
  0xea   : > { %v889_v23 = vmul.f32 %v2071_v41, %v2887_v29  ;;  %vm897_vm10 = vcmp.eq.f32.partialorder %v2919_v4, inf  ;;  %3765 = vst [vmem:[#allocation32_spill] sm:$0xff] %v3081_v37  ;;  %v985_v5 = vmul.f32 %v3061_v26, %v3031_v30  ;;  %v986_v51 = vmul.f32 %v3064_v47, %v3034_v54 }
  0xeb   : > { %v884_v41 = vsel %vm883_vm6, %v2878_v17, %v882_v61  ;;  %vm904_vm11 = vcmp.eq.f32.partialorder %v2924_v8, inf  ;;  %v924_v43 = vmax.f32 %v916_v55, 1e-08  ;;  %v987_v59 = vmul.f32 %v3081_v37, %v3040_v2  ;;  %v3111_v55 = vld [vmem:[%s2642_s10 + $0x58] sm:$0xff] }
  0xec   : > { %v3107_v6 = vmul.f32 %v3084_v40, %v3043_v7  ;;  %v917_v61 = vmul.f32 %v873_v46, %v2929_v12  ;;  %3769 = vst [vmem:[#allocation36_spill] sm:$0xff] %v3111_v55  ;;  %v3118_v62 = vmul.f32 %v3098_v18, %v3055_v58  ;;  %v3122_v3 = vmul.f32 %v3101_v13, %v3058_v21  ;;  %v3154_v37 = vld [vmem:[%s2642_s10 + $0x78] sm:$0xff]  ;;  %s1976_s10 = sshll.u32 %s2428_s11, 5  ;;  %s2260_s11 = scalar_lea.vmem %s2259_s28, 64 }
  0xed   : > { %v1004_v45 = vrot.slane %v1003_v15, 4  ;;  %v880_v46 = vsel %vm878_vm5, %v879_v32, %v877_v50  ;;  %v3138_v57 = vmul.f32 %v3111_v55, %v3075_v48  ;;  %v3142_v18 = vmul.f32 %v3114_v56, %v3078_v31  ;;  %v963_v50 = vld [vmem:[%s2639_s26 + $0x78] sm:$0xff]  ;;  %3773 = vst [vmem:[#allocation40_spill] sm:$0xff] %v3154_v37  ;;  %s1955_s26 = sshll.u32 %s2622_s16, 1  ;;  %s1797_s21 = scalar_lea.hbm %s3803_s25, %s1976_s10 }
  0xee   : > { %v2073_v12 = vpop.eup %2072  ;;  %v3145_v13 = vadd.f32 %v997_v28, %v3015_v38  ;;  %v887_v9 = vsel %vm885_vm7, %v886_v52, %v884_v41  ;;  %v891_v32 = vsel %vm890_vm8, %v2887_v29, %v889_v23  ;;  %v3158_v55 = vmul.f32 %v3131_v42, %v3095_v0  ;;  %s550_s30 = scalar_lea.vmem [#allocation11], %s1955_s26 }
  0xef   : > { %v2075_v40 = vpop.eup %2074  ;;  %v3161_v56 = vmul.f32 %v3134_v63, %v962_v49  ;;  %vm899_vm12 = vcmp.eq.f32.partialorder %v2919_v4, 0.0  ;;  %2078 = vrcp.f32 %v924_v43  ;;  %v3165_v17 = vmul.f32 %v3154_v37, %v963_v50  ;;  %v1544_v43 = vld [vmem:[%s3680_s9 + $0x10] sm:$0xff]  ;;  %s1799_s1 = sshll.u32 %s550_s30, 4  ;;  %s1800_s1 = int_to_ptr.vmem [resolvable:$true] %s1799_s1 }
  0xf0   : > { %v3167_v38 = vadd.f32 %v986_v51, %v984_v36  ;;  %v3169_v52 = vadd.f32 %v987_v59, %v985_v5  ;;  %v896_v28 = vmul.f32 %v2073_v12, %v2919_v4  ;;  %vm906_vm13 = vcmp.eq.f32.partialorder %v2924_v8, 0.0  ;;  %1558 = vperm.xlu1 %2045, %v1544_v43   ;;  %s2254_s19 = scalar_lea.vmem %s1800_s1, 32  ;;  %p2261_p6 = scmp.lt.s32.totalorder %s1800_s1, %s2259_s28 }
  0xf1   : > { %vm911_vm14 = vcmp.eq.f32.partialorder %v2956_v60, inf  ;;  %v918_v23 = vmul.f32 %v880_v46, %v2933_v10  ;;  %v925_v41 = vmax.f32 %v917_v61, 1e-08  ;;  %v3175_v42 = vadd.f32 %v1004_v45, %v1003_v15  ;;  %p2255_p13 = scmp.ne.s32.totalorder %s1800_s1, %s2254_s19  ;;  %p2262_p9 = scmp.lt.s32.totalorder %s2260_s11, %s2254_s19 }
  0xf2   : > { %v3774_v36 = vand.u32 2147483648, %v2887_v29  ;;  %v903_v59 = vmul.f32 %v2075_v40, %v2924_v8  ;;  %v919_v51 = vmul.f32 %v887_v9, %v2937_v35  ;;  %v999_v20 = vrot.slane %v3145_v13, 2 }
  0xf3   : > { %v2077_v12 = vpop.eup %2076  ;;  %v1052_v45 = vmul.f32 %v2954_v53, %v2954_v53  ;;  %v1053_v10 = vmul.f32 %v2990_v33, %v2990_v33  ;;  %v1054_v15 = vmul.f32 %v2962_v16, %v2962_v16  ;;  %v1055_v29 = vmul.f32 %v2993_v34, %v2993_v34  ;;  %p2256_p2 = pnand %p2255_p13, %p3805_p10  ;;  %p2263_p12 = por %p2262_p9, %p2261_p6 }
  0xf4   : > { %v894_v5 = vsel %vm892_vm9, %v3774_v36, %v891_v32  ;;  %vm913_vm15 = vcmp.eq.f32.partialorder %v2956_v60, 0.0  ;;  %v1056_v35 = vmul.f32 %v3028_v14, %v3028_v14  ;;  %v1057_v40 = vmul.f32 %v3031_v30, %v3031_v30  ;;  %v1542_v30 = vld [vmem:[%s3680_s9] sm:$0xff] }
  0xf5   : > { %v1058_v53 = vmul.f32 %v3034_v54, %v3034_v54  ;;  %v1059_v33 = vmul.f32 %v3040_v2, %v3040_v2  ;;  %v1060_v16 = vmul.f32 %v3043_v7, %v3043_v7  ;;  %v1061_v34 = vmul.f32 %v3055_v58, %v3055_v58  ;;  %1548 = vperm.xlu1 %2045, %v1542_v30   ;;  %p2257_p4 = pneg %p2256_p2 }
  0xf6   : > { %v1062_v61 = vmul.f32 %v3058_v21, %v3058_v21  ;;  %v1063_v14 = vmul.f32 %v3075_v48, %v3075_v48  ;;  %v898_v54 = vsel %vm897_vm10, %v2919_v4, %v896_v28  ;;  %v910_v2 = vmul.f32 %v2077_v12, %v2956_v60 }
  0xf7   : > { %v926_v7 = vmax.f32 %v918_v23, 1e-08  ;;  %2080 = vrcp.f32 %v925_v41  ;;  %v905_v58 = vsel %vm904_vm11, %v2924_v8, %v903_v59  ;;  %v1064_v21 = vmul.f32 %v3078_v31, %v3078_v31  ;;  %p2264_p0 = pnand %p2263_p12, %p2257_p4 }
  0xf8   : > { %v1065_v48 = vmul.f32 %v3095_v0, %v3095_v0  ;;  %v1068_v46 = vadd.f32 %v1054_v15, %v1052_v45  ;;  %v1066_v9 = vmul.f32 %v962_v49, %v962_v49  ;;  %v1075_v32 = vadd.f32 %v1055_v29, %v1053_v10 }
  0xf9   : > { %v1082_v43 = vadd.f32 %v1058_v53, %v1056_v35  ;;  %v1089_v36 = vadd.f32 %v1059_v33, %v1057_v40  ;;  %v1067_v28 = vmul.f32 %v963_v50, %v963_v50  ;;  %v1096_v23 = vadd.f32 %v1062_v61, %v1060_v16 }
  0xfa   : > { %v1069_v12 = vrot.slane %v1068_v46, 4  ;;  %v1103_v41 = vadd.f32 %v1063_v14, %v1061_v34  ;;  %v920_v37 = vmul.f32 %v894_v5, %v2942_v19  ;;  %v1076_v63 = vrot.slane %v1075_v32, 4 }
  0xfb   : > { %v1083_v59 = vrot.slane %v1082_v43, 4  ;;  %v1090_v47 = vrot.slane %v1089_v36, 4  ;;  %v3775_v31 = vand.u32 2147483648, %v2919_v4  ;;  %v927_v45 = vmax.f32 %v919_v51, 1e-08 }
  0xfc   : > { %v3232_v49 = vadd.f32 %v999_v20, %v3145_v13  ;;  %v1070_v10 = vadd.f32 %v1069_v12, %v1068_v46  ;;  %v3776_v50 = vand.u32 2147483648, %v2924_v8  ;;  %v912_v19 = vsel %vm911_vm14, %v2956_v60, %v910_v2  ;;  %v3241_v35 = vpop.eup %2078 }
  0xfd   : > { %v901_v0 = vsel %vm899_vm12, %v3775_v31, %v898_v54  ;;  %v1097_v5 = vrot.slane %v1096_v23, 4  ;;  %v1110_v29 = vadd.f32 %v1066_v9, %v1064_v21  ;;  %v1077_v4 = vadd.f32 %v1076_v63, %v1075_v32 }
  0xfe   : > { %v908_v15 = vsel %vm906_vm13, %v3776_v50, %v905_v58  ;;  %v1084_v40 = vadd.f32 %v1083_v59, %v1082_v43  ;;  %v1104_v51 = vrot.slane %v1103_v41, 4  ;;  %v1117_v53 = vadd.f32 %v1067_v28, %v1065_v48 }
  0xff   : > { %v921_v13 = vmul.f32 %v901_v0, %v2978_v1  ;;  %2082 = vrcp.f32 %v926_v7  ;;  %v1071_v20 = vrot.slane %v1070_v10, 2  ;;  %v1091_v33 = vadd.f32 %v1090_v47, %v1089_v36 }
 0x100   : > { %v3777_v8 = vand.u32 2147483648, %v2956_v60  ;;  %v928_v34 = vmax.f32 %v920_v37, 1e-08  ;;  %2084 = vrcp.f32 %v927_v45  ;;  %v1011_v61 = vrot.slane %v3167_v38, 4 }
 0x101   : > { %v922_v14 = vmul.f32 %v908_v15, %v2982_v22  ;;  %v1006_v63 = vrot.slane %v3175_v42, 2  ;;  %v1098_v30 = vadd.f32 %v1097_v5, %v1096_v23  ;;  %v1111_v54 = vrot.slane %v1110_v29, 4 }
 0x102   : > { %v915_v16 = vsel %vm913_vm15, %v3777_v8, %v912_v19  ;;  %v1078_v2 = vrot.slane %v1077_v4, 2  ;;  %v1085_v1 = vrot.slane %v1084_v40, 2  ;;  %v1105_v7 = vadd.f32 %v1104_v51, %v1103_v41 }
 0x103   : > { %v1118_v58 = vrot.slane %v1117_v53, 4  ;;  %v923_v47 = vmul.f32 %v915_v16, %v2986_v25  ;;  %v929_v21 = vmax.f32 %v921_v13, 1e-08  ;;  %v1072_v48 = vadd.f32 %v1071_v20, %v1070_v10 }
 0x104   : > { %v1092_v60 = vrot.slane %v1091_v33, 2  ;;  %v3252_v46 = vpop.eup %2080  ;;  %2086 = vrcp.f32 %v928_v34  ;;  %v1012_v37 = vadd.f32 %v1011_v61, %v3167_v38  ;;  %v1018_v22 = vrot.slane %v3169_v52, 4 }
 0x105   : > { %v1024_v9 = vadd.f32 %v3122_v3, %v3107_v6  ;;  %v930_v32 = vmax.f32 %v922_v14, 1e-08  ;;  %v1031_v43 = vadd.f32 %v3138_v57, %v3118_v62  ;;  %v1099_v36 = vrot.slane %v1098_v30, 2 }
 0x106   : > { %v1112_v28 = vadd.f32 %v1111_v54, %v1110_v29  ;;  %v1079_v25 = vadd.f32 %v1078_v2, %v1077_v4  ;;  %v1086_v12 = vadd.f32 %v1085_v1, %v1084_v40  ;;  %v1106_v23 = vrot.slane %v1105_v7, 2 }
 0x107   : > { %v1119_v41 = vadd.f32 %v1118_v58, %v1117_v53  ;;  %v931_v59 = vmax.f32 %v923_v47, 1e-08  ;;  %2088 = vrcp.f32 %v929_v21  ;;  %v1073_v31 = vrot.slane %v1072_v48, 1  ;;  %v3778_v47 = vld [vmem:[#allocation31_spill] sm:$0xff]  ;;  %v3779_v21 = vld [vmem:[#allocation32_spill] sm:$0xff] }
 0x108   : > { %v1093_v0 = vadd.f32 %v1092_v60, %v1091_v33  ;;  %v1013_v38 = vrot.slane %v1012_v37, 2  ;;  %v3261_v45 = vadd.f32 %v1018_v22, %v3169_v52  ;;  %v1025_v10 = vrot.slane %v1024_v9, 4 }
 0x109   : > { %v1038_v3 = vadd.f32 %v3161_v56, %v3142_v18  ;;  %2090 = vrcp.f32 %v930_v32  ;;  %v1032_v57 = vrot.slane %v1031_v43, 4  ;;  %v1100_v62 = vadd.f32 %v1099_v36, %v1098_v30 }
 0x10a   : > { %v1113_v6 = vrot.slane %v1112_v28, 2  ;;  %v1080_v50 = vrot.slane %v1079_v25, 1  ;;  %v1087_v15 = vrot.slane %v1086_v12, 1  ;;  %v1107_v19 = vadd.f32 %v1106_v23, %v1105_v7 }
 0x10b   : > { %v1120_v5 = vrot.slane %v1119_v41, 2  ;;  %2092 = vrcp.f32 %v931_v59  ;;  %v3266_v29 = vadd.f32 %v1006_v63, %v3175_v42  ;;  %v3268_v4 = vadd.f32 %v1073_v31, %v1072_v48  ;;  %v3780_v31 = vld [vmem:[#allocation33_spill] sm:$0xff] }
 0x10c   : > { %v1094_v52 = vrot.slane %v1093_v0, 1  ;;  %v3270_v40 = vpop.eup %2082  ;;  %v3272_v51 = vadd.f32 %v1013_v38, %v1012_v37  ;;  %v1020_v56 = vrot.slane %v3261_v45, 2  ;;  %v3275_v18 = vadd.f32 %v1025_v10, %v1024_v9  ;;  %v3781_v38 = vld [vmem:[#allocation35_spill] sm:$0xff] }
 0x10d   : > { %v1039_v53 = vrot.slane %v1038_v3, 4  ;;  %v3277_v13 = vpop.eup %2084  ;;  %v3279_v20 = vadd.f32 %v1032_v57, %v1031_v43  ;;  %v3283_v42 = vadd.f32 %v3165_v17, %v3158_v55  ;;  %v1101_v33 = vrot.slane %v1100_v62, 1 }
 0x10e   : > { %v1114_v8 = vadd.f32 %v1113_v6, %v1112_v28  ;;  %v3285_v16 = vadd.f32 %v1080_v50, %v1079_v25  ;;  %v3287_v34 = vadd.f32 %v1087_v15, %v1086_v12  ;;  %v1108_v61 = vrot.slane %v1107_v19, 1  ;;  %v3782_v6 = vld [vmem:[#allocation34_spill] sm:$0xff]  ;;  %v3783_v15 = vld [vmem:[#allocation36_spill] sm:$0xff] }
 0x10f   : > { %v1121_v14 = vadd.f32 %v1120_v5, %v1119_v41  ;;  %v3289_v63 = vadd.f32 %v1094_v52, %v1093_v0  ;;  %2094 = vrsqrt.f32 %v3268_v4  ;;  %v1180_v30 = vmul.f32 %v2965_v11, %v2965_v11  ;;  %v3784_v5 = vld [vmem:[#allocation37_spill] sm:$0xff] }
 0x110   : > { %v1181_v54 = vmul.f32 %v3000_v24, %v3000_v24  ;;  %v1182_v55 = vmul.f32 %v2968_v44, %v2968_v44  ;;  %v1183_v17 = vmul.f32 %v3003_v27, %v3003_v27  ;;  %v1184_v2 = vmul.f32 %v3046_v39, %v3046_v39 }
 0x111   : > { %v1185_v1 = vmul.f32 %v3061_v26, %v3061_v26  ;;  %v3304_v7 = vpop.eup %2086  ;;  %v3306_v58 = vadd.f32 %v1101_v33, %v1100_v62  ;;  %v1115_v11 = vrot.slane %v1114_v8, 1  ;;  %v1186_v24 = vmul.f32 %v3778_v47, %v3778_v47 }
 0x112   : > { %v1187_v44 = vmul.f32 %v3779_v21, %v3779_v21  ;;  %v1027_v48 = vrot.slane %v3275_v18, 2  ;;  %v3313_v27 = vadd.f32 %v1108_v61, %v1107_v19  ;;  %v1122_v60 = vrot.slane %v1121_v14, 1 }
 0x113   : > { %2096 = vrsqrt.f32 %v3285_v16  ;;  %v3316_v39 = vadd.f32 %v1039_v53, %v1038_v3  ;;  %v1196_v26 = vadd.f32 %v1182_v55, %v1180_v30  ;;  %v1203_v37 = vadd.f32 %v1183_v17, %v1181_v54  ;;  %v3785_v53 = vld [vmem:[#allocation39_spill] sm:$0xff] }
 0x114   : > { %2098 = vrsqrt.f32 %v3287_v34  ;;  %v3319_v22 = vpop.eup %2088  ;;  %v1046_v9 = vrot.slane %v3283_v42, 4  ;;  %v1210_v32 = vadd.f32 %v1186_v24, %v1184_v2  ;;  %v1217_v43 = vadd.f32 %v1187_v44, %v1185_v1 }
 0x115   : > { %2100 = vrsqrt.f32 %v3289_v63  ;;  %v3323_v36 = vadd.f32 %v1115_v11, %v1114_v8  ;;  %v1197_v28 = vrot.slane %v1196_v26, 4  ;;  %v1204_v25 = vrot.slane %v1203_v37, 4 }
 0x116   : > { %2102 = vrsqrt.f32 %v3306_v58  ;;  %v3326_v12 = vpop.eup %2090  ;;  %v3328_v23 = vadd.f32 %v1122_v60, %v1121_v14  ;;  %v1211_v41 = vrot.slane %v1210_v32, 4  ;;  %v1218_v59 = vrot.slane %v1217_v43, 4  ;;  %v3786_v60 = vld [vmem:[#allocation38_spill] sm:$0xff] }
 0x117   : > { %2104 = vrsqrt.f32 %v3313_v27  ;;  %v1188_v0 = vmul.f32 %v3780_v31, %v3780_v31  ;;  %v1190_v10 = vmul.f32 %v3781_v38, %v3781_v38  ;;  %v1198_v3 = vadd.f32 %v1197_v28, %v1196_v26 }
 0x118   : > { %v1205_v57 = vadd.f32 %v1204_v25, %v1203_v37  ;;  %v3335_v62 = vpop.eup %2092  ;;  %v1189_v50 = vmul.f32 %v3782_v6, %v3782_v6  ;;  %v1191_v19 = vmul.f32 %v3783_v15, %v3783_v15  ;;  %v1192_v52 = vmul.f32 %v3784_v5, %v3784_v5  ;;  %v3787_v37 = vld [vmem:[#allocation40_spill] sm:$0xff] }
 0x119   : > { %v1194_v33 = vmul.f32 %v3785_v53, %v3785_v53  ;;  %vm1126_vm0 = vcmp.eq.f32.partialorder %v3268_v4, inf  ;;  %2106 = vrsqrt.f32 %v3323_v36  ;;  %v1199_v8 = vrot.slane %v1198_v3, 2 }
 0x11a   : > { %v1212_v61 = vadd.f32 %v1211_v41, %v1210_v32  ;;  %v1129_v14 = vand.u32 2147483648, %v3268_v4  ;;  %2108 = vrsqrt.f32 %v3328_v23  ;;  %v1206_v30 = vrot.slane %v1205_v57, 2 }
 0x11b   : > { %v1219_v54 = vadd.f32 %v1218_v59, %v1217_v43  ;;  %vm1133_vm1 = vcmp.eq.f32.partialorder %v3285_v16, inf  ;;  %v1136_v55 = vand.u32 2147483648, %v3285_v16  ;;  %v1143_v17 = vand.u32 2147483648, %v3287_v34 }
 0x11c   : > { %v1200_v2 = vadd.f32 %v1199_v8, %v1198_v3  ;;  %v1224_v1 = vadd.f32 %v1190_v10, %v1188_v0  ;;  %v2095_v11 = vpop.eup %2094  ;;  %v1150_v47 = vand.u32 2147483648, %v3289_v63  ;;  %v1207_v24 = vadd.f32 %v1206_v30, %v1205_v57 }
 0x11d   : > { %v1231_v21 = vadd.f32 %v1191_v19, %v1189_v50  ;;  %v1238_v44 = vadd.f32 %v1194_v33, %v1192_v52  ;;  %v1193_v26 = vmul.f32 %v3786_v60, %v3786_v60  ;;  %v1195_v32 = vmul.f32 %v3787_v37, %v3787_v37 }
 0x11e   : > { %v1201_v43 = vrot.slane %v1200_v2, 1  ;;  %v1213_v28 = vrot.slane %v1212_v61, 2  ;;  %v1157_v25 = vand.u32 2147483648, %v3306_v58  ;;  %v1164_v41 = vand.u32 2147483648, %v3313_v27 }
 0x11f   : > { %v1208_v59 = vrot.slane %v1207_v24, 1  ;;  %v1220_v31 = vrot.slane %v1219_v54, 2  ;;  %v1125_v38 = vmul.f32 %v2095_v11, %v3268_v4  ;;  %v1225_v57 = vrot.slane %v1224_v1, 4 }
 0x120   : > { %v2097_v0 = vpop.eup %2096  ;;  %v3360_v10 = vadd.f32 %v1201_v43, %v1200_v2  ;;  %v1214_v3 = vadd.f32 %v1213_v28, %v1212_v61  ;;  %vm1128_vm2 = vcmp.eq.f32.partialorder %v3268_v4, 0.0  ;;  %vm1135_vm3 = vcmp.eq.f32.partialorder %v3285_v16, 0.0 }
 0x121   : > { %v2099_v6 = vpop.eup %2098  ;;  %v3364_v50 = vadd.f32 %v1208_v59, %v1207_v24  ;;  %v1221_v15 = vadd.f32 %v1220_v31, %v1219_v54  ;;  %v1232_v19 = vrot.slane %v1231_v21, 4  ;;  %v1239_v5 = vrot.slane %v1238_v44, 4 }
 0x122   : > { %v2101_v52 = vpop.eup %2100  ;;  %vm1140_vm4 = vcmp.eq.f32.partialorder %v3287_v34, inf  ;;  %vm1147_vm5 = vcmp.eq.f32.partialorder %v3289_v63, inf  ;;  %vm1154_vm6 = vcmp.eq.f32.partialorder %v3306_v58, inf  ;;  %v1215_v53 = vrot.slane %v1214_v3, 1 }
 0x123   : > { %v1226_v33 = vadd.f32 %v1225_v57, %v1224_v1  ;;  %v1245_v8 = vadd.f32 %v1195_v32, %v1193_v26  ;;  %2110 = vrsqrt.f32 %v3360_v10  ;;  %v2103_v61 = vpop.eup %2102  ;;  %v1132_v30 = vmul.f32 %v2097_v0, %v3285_v16 }
 0x124   : > { %vm1161_vm7 = vcmp.eq.f32.partialorder %v3313_v27, inf  ;;  %vm1168_vm8 = vcmp.eq.f32.partialorder %v3323_v36, inf  ;;  %v1222_v54 = vrot.slane %v1221_v15, 1  ;;  %v1233_v2 = vadd.f32 %v1232_v19, %v1231_v21  ;;  %v2105_v24 = vpop.eup %2104 }
 0x125   : > { %v1240_v11 = vadd.f32 %v1239_v5, %v1238_v44  ;;  %v1171_v60 = vand.u32 2147483648, %v3323_v36  ;;  %v3374_v37 = vadd.f32 %v1215_v53, %v1214_v3  ;;  %v1227_v43 = vrot.slane %v1226_v33, 2 }
 0x126   : > { %v1246_v1 = vrot.slane %v1245_v8, 4  ;;  %v1127_v26 = vsel %vm1126_vm0, %v3268_v4, %v1125_v38  ;;  %vm1142_vm9 = vcmp.eq.f32.partialorder %v3287_v34, 0.0  ;;  %vm1175_vm10 = vcmp.eq.f32.partialorder %v3328_v23, inf  ;;  %v2107_v31 = vpop.eup %2106 }
 0x127   : > { %v1234_v32 = vrot.slane %v1233_v2, 2  ;;  %v1241_v28 = vrot.slane %v1240_v11, 2  ;;  %vm1149_vm11 = vcmp.eq.f32.partialorder %v3289_v63, 0.0  ;;  %vm1156_vm12 = vcmp.eq.f32.partialorder %v3306_v58, 0.0  ;;  %v2109_v19 = vpop.eup %2108 }
 0x128   : > { %vm1163_vm13 = vcmp.eq.f32.partialorder %v3313_v27, 0.0  ;;  %vm1170_vm14 = vcmp.eq.f32.partialorder %v3323_v36, 0.0  ;;  %v3385_v21 = vadd.f32 %v1222_v54, %v1221_v15  ;;  %v1228_v44 = vadd.f32 %v1227_v43, %v1226_v33 }
 0x129   : > { %v1247_v59 = vadd.f32 %v1246_v1, %v1245_v8  ;;  %2112 = vrsqrt.f32 %v3364_v50  ;;  %v1134_v0 = vsel %vm1133_vm1, %v3285_v16, %v1132_v30  ;;  %v1139_v38 = vmul.f32 %v2099_v6, %v3287_v34 }
 0x12a   : > { %vm1177_vm15 = vcmp.eq.f32.partialorder %v3328_v23, 0.0  ;;  %v1235_v3 = vadd.f32 %v1234_v32, %v1233_v2  ;;  %v1242_v57 = vadd.f32 %v1241_v28, %v1240_v11  ;;  %v1146_v5 = vmul.f32 %v2101_v52, %v3289_v63 }
 0x12b   : > { %v1229_v15 = vrot.slane %v1228_v44, 1  ;;  %v1248_v53 = vrot.slane %v1247_v59, 2  ;;  %2114 = vrsqrt.f32 %v3374_v37  ;;  %v1153_v33 = vmul.f32 %v2103_v61, %v3306_v58 }
 0x12c   : > { %v1160_v8 = vmul.f32 %v2105_v24, %v3313_v27  ;;  %v1236_v54 = vrot.slane %v1235_v3, 1  ;;  %v1243_v43 = vrot.slane %v1242_v57, 1  ;;  %v1167_v30 = vmul.f32 %v2107_v31, %v3323_v36 }
 0x12d   : > { %v3398_v6 = vadd.f32 %v1229_v15, %v1228_v44  ;;  %v1249_v1 = vadd.f32 %v1248_v53, %v1247_v59  ;;  %2116 = vrsqrt.f32 %v3385_v21  ;;  %v1174_v2 = vmul.f32 %v2109_v19, %v3328_v23 }
 0x12e   : > { %v1178_v52 = vand.u32 2147483648, %v3328_v23  ;;  %v3403_v11 = vadd.f32 %v1236_v54, %v1235_v3  ;;  %v3405_v32 = vadd.f32 %v1243_v43, %v1242_v57  ;;  %v1130_v61 = vsel %vm1128_vm2, %v1129_v14, %v1127_v26 }
 0x12f   : > { %v1137_v24 = vsel %vm1135_vm3, %v1136_v55, %v1134_v0  ;;  %v1250_v28 = vrot.slane %v1249_v1, 1  ;;  %2118 = vrsqrt.f32 %v3398_v6  ;;  %v1141_v44 = vsel %vm1140_vm4, %v3287_v34, %v1139_v38 }
 0x130   : > { %v1148_v59 = vsel %vm1147_vm5, %v3289_v63, %v1146_v5  ;;  %v1155_v4 = vsel %vm1154_vm6, %v3306_v58, %v1153_v33  ;;  %2120 = vrsqrt.f32 %v3403_v11  ;;  %v1162_v16 = vsel %vm1161_vm7, %v3313_v27, %v1160_v8  ;;  %v2111_v26 = vpop.eup %2110 }
 0x131   : > { %v1169_v14 = vsel %vm1168_vm8, %v3323_v36, %v1167_v30  ;;  %v3432_v55 = vadd.f32 %v1250_v28, %v1249_v1  ;;  %2122 = vrsqrt.f32 %v3405_v32  ;;  %v1176_v31 = vsel %vm1175_vm10, %v3328_v23, %v1174_v2 }
 0x132   : > { %vm1254_vm0 = vcmp.eq.f32.partialorder %v3360_v10, inf  ;;  %v1257_v0 = vand.u32 2147483648, %v3360_v10  ;;  %v1144_v38 = vsel %vm1142_vm9, %v1143_v17, %v1141_v44  ;;  %v1253_v3 = vmul.f32 %v2111_v26, %v3360_v10 }
 0x133   : > { %vm1256_vm1 = vcmp.eq.f32.partialorder %v3360_v10, 0.0  ;;  %2124 = vrsqrt.f32 %v3432_v55  ;;  %v2336_v57 = vmov 0.0   ;;  %v1151_v19 = vsel %vm1149_vm11, %v1150_v47, %v1148_v59 }
 0x134   : > { %1505 = vmatprep.mubr.f32.mxu0 %v2336_v57  ;;  %1643 = vmatprep.mubr.f32.mxu1 %v2336_v57  ;;  %v1158_v34 = vsel %vm1156_vm12, %v1157_v25, %v1155_v4  ;;  %v3461_v17 = vsel %vm1163_vm13, %v1164_v41, %v1162_v16  ;;  %v3467_v5 = vsel %vm1170_vm14, %v1171_v60, %v1169_v14  ;;  %vm1261_vm2 = vcmp.eq.f32.partialorder %v3364_v50, inf }
 0x135   : > { %v3471_v63 = vsel %vm1177_vm15, %v1178_v52, %v1176_v31  ;;  %v1255_v47 = vsel %vm1254_vm0, %v3360_v10, %v1253_v3  ;;  %vm1263_vm3 = vcmp.eq.f32.partialorder %v3364_v50, 0.0  ;;  %v1264_v25 = vand.u32 2147483648, %v3364_v50 }
 0x136   : > { %v2113_v58 = vpop.eup %2112  ;;  %v1258_v27 = vsel %vm1256_vm1, %v1257_v0, %v1255_v47  ;;  %vm1268_vm4 = vcmp.eq.f32.partialorder %v3374_v37, inf  ;;  %vm1270_vm5 = vcmp.eq.f32.partialorder %v3374_v37, 0.0  ;;  %v1271_v23 = vand.u32 2147483648, %v3374_v37 }
 0x137   : > { %v1260_v36 = vmul.f32 %v2113_v58, %v3364_v50  ;;  %vm1275_vm6 = vcmp.eq.f32.partialorder %v3385_v21, inf  ;;  %v1308_v41 = vmul.f32 %v1258_v27, %v1130_v61  ;;  %vm1277_vm7 = vcmp.eq.f32.partialorder %v3385_v21, 0.0 }
 0x138   : > { %v2115_v10 = vpop.eup %2114  ;;  %v1278_v60 = vand.u32 2147483648, %v3385_v21  ;;  %vm1282_vm8 = vcmp.eq.f32.partialorder %v3398_v6, inf  ;;  %vm1284_vm9 = vcmp.eq.f32.partialorder %v3398_v6, 0.0  ;;  %v1285_v33 = vand.u32 2147483648, %v3398_v6 }
 0x139   : > { %v1262_v15 = vsel %vm1261_vm2, %v3364_v50, %v1260_v36  ;;  %v1267_v53 = vmul.f32 %v2115_v10, %v3374_v37  ;;  %vm1289_vm10 = vcmp.eq.f32.partialorder %v3403_v11, inf  ;;  %vm1291_vm11 = vcmp.eq.f32.partialorder %v3403_v11, 0.0 }
 0x13a   : > { %v2117_v8 = vpop.eup %2116  ;;  %v1265_v54 = vsel %vm1263_vm3, %v1264_v25, %v1262_v15  ;;  %v1292_v43 = vand.u32 2147483648, %v3403_v11  ;;  %v1316_v30 = vmax.f32 %v1308_v41, 1e-08  ;;  %vm1296_vm12 = vcmp.eq.f32.partialorder %v3405_v32, inf }
 0x13b   : > { %v1269_v1 = vsel %vm1268_vm4, %v3374_v37, %v1267_v53  ;;  %v1274_v2 = vmul.f32 %v2117_v8, %v3385_v21  ;;  %v1309_v52 = vmul.f32 %v1265_v54, %v1137_v24  ;;  %vm1298_vm13 = vcmp.eq.f32.partialorder %v3405_v32, 0.0 }
 0x13c   : > { %v2119_v61 = vpop.eup %2118  ;;  %v1272_v28 = vsel %vm1270_vm5, %v1271_v23, %v1269_v1  ;;  %v1299_v50 = vand.u32 2147483648, %v3405_v32  ;;  %vm1303_vm14 = vcmp.eq.f32.partialorder %v3432_v55, inf  ;;  %vm1305_vm15 = vcmp.eq.f32.partialorder %v3432_v55, 0.0 }
 0x13d   : > { %v2121_v44 = vpop.eup %2120  ;;  %v1276_v59 = vsel %vm1275_vm6, %v3385_v21, %v1274_v2  ;;  %v1281_v4 = vmul.f32 %v2119_v61, %v3398_v6  ;;  %v1310_v16 = vmul.f32 %v1272_v28, %v1144_v38  ;;  %v1317_v14 = vmax.f32 %v1309_v52, 1e-08 }
 0x13e   : > { %v2123_v24 = vpop.eup %2122  ;;  %v1279_v37 = vsel %vm1277_vm7, %v1278_v60, %v1276_v59  ;;  %v1288_v26 = vmul.f32 %v2121_v44, %v3403_v11  ;;  %2126 = vrcp.f32 %v1316_v30  ;;  %v1306_v27 = vand.u32 2147483648, %v3432_v55  ;;  %v3791_v44 = vld [vmem:[#allocation23_spill] sm:$0xff] }
 0x13f   : > { %v1283_v31 = vsel %vm1282_vm8, %v3398_v6, %v1281_v4  ;;  %v1295_v0 = vmul.f32 %v2123_v24, %v3405_v32  ;;  %v1311_v3 = vmul.f32 %v1279_v37, %v1151_v19  ;;  %v1318_v47 = vmax.f32 %v1310_v16, 1e-08  ;;  %v3796_v24 = vld [vmem:[#allocation29_spill] sm:$0xff] }
 0x140   : > { %v2125_v58 = vpop.eup %2124  ;;  %v1286_v38 = vsel %vm1284_vm9, %v1285_v33, %v1283_v31  ;;  %v1290_v21 = vsel %vm1289_vm10, %v3403_v11, %v1288_v26  ;;  %2128 = vrcp.f32 %v1317_v14  ;;  %v1047_v60 = vadd.f32 %v1046_v9, %v3283_v42  ;;  %v3788_v9 = vld [vmem:[#allocation25_spill] sm:$0xff] }
 0x141   : > { %v1293_v25 = vsel %vm1291_vm11, %v1292_v43, %v1290_v21  ;;  %v1297_v36 = vsel %vm1296_vm12, %v3405_v32, %v1295_v0  ;;  %v1302_v19 = vmul.f32 %v2125_v58, %v3432_v55  ;;  %v1312_v23 = vmul.f32 %v1286_v38, %v1158_v34 }
 0x142   : > { %v1300_v6 = vsel %vm1298_vm13, %v1299_v50, %v1297_v36  ;;  %v1313_v41 = vmul.f32 %v1293_v25, %v3461_v17  ;;  %v1319_v10 = vmax.f32 %v1311_v3, 1e-08  ;;  %2130 = vrcp.f32 %v1318_v47 }
 0x143   : > { %v1304_v11 = vsel %vm1303_vm14, %v3432_v55, %v1302_v19  ;;  %v1314_v15 = vmul.f32 %v1300_v6, %v3467_v5  ;;  %v1320_v53 = vmax.f32 %v1312_v23, 1e-08  ;;  %vm1354_vm0 = vcmask 1041409   ;;  %v3798_v19 = vld [vmem:[#allocation30_spill] sm:$0xff] }
 0x144   : > { %v1034_v34 = vrot.slane %v3279_v20, 2  ;;  %v1307_v32 = vsel %vm1305_vm15, %v1306_v27, %v1304_v11  ;;  %v1321_v17 = vmax.f32 %v1313_v41, 1e-08  ;;  %2132 = vrcp.f32 %v1319_v10  ;;  %v1344_v11 = vpop.permute.xlu0 %1343 }
 0x145   : > { %v1041_v33 = vrot.slane %v3316_v39, 2  ;;  %v1315_v8 = vmul.f32 %v1307_v32, %v3471_v63  ;;  %v1322_v42 = vmax.f32 %v1314_v15, 1e-08  ;;  %2134 = vrcp.f32 %v1320_v53  ;;  %v3790_v63 = vld [vmem:[#allocation27_spill] sm:$0xff] }
 0x146   : > { %v3789_v54 = vrot.slane %v3788_v9, 1  ;;  %v1001_v5 = vrot.slane %v3232_v49, 1  ;;  %v1021_v30 = vadd.f32 %v1020_v56, %v3261_v45  ;;  %2136 = vrcp.f32 %v1321_v17  ;;  %v3793_v56 = vld [vmem:[#allocation28_spill] sm:$0xff] }
 0x147   : > { %v1028_v55 = vadd.f32 %v1027_v48, %v3275_v18  ;;  %v1048_v1 = vrot.slane %v1047_v60, 2  ;;  %v1323_v2 = vmax.f32 %v1315_v8, 1e-08  ;;  %2138 = vrcp.f32 %v1322_v42  ;;  %v3794_v18 = vld [vmem:[#allocation24_spill] sm:$0xff] }
 0x148   : > { %v624_v43 = vadd.f32 %v3789_v54, %v3788_v9  ;;  %v644_v52 = vrot.slane %v3790_v63, 1  ;;  %v1008_v61 = vrot.slane %v3266_v29, 1  ;;  %v1015_v28 = vrot.slane %v3272_v51, 1 }
 0x149   : > { %v1035_v50 = vadd.f32 %v1034_v34, %v3279_v20  ;;  %v3792_v59 = vrot.slane %v3791_v44, 1  ;;  %v651_v4 = vrot.slane %v3793_v56, 1  ;;  %v1042_v16 = vadd.f32 %v1041_v33, %v3316_v39  ;;  %v3797_v20 = vld [vmem:[#allocation26_spill] sm:$0xff] }
 0x14a   : > { %2140 = vrcp.f32 %v1323_v2  ;;  %v3795_v48 = vrot.slane %v3794_v18, 1  ;;  %v658_v37 = vrot.slane %v3796_v24, 1  ;;  %v1002_v26 = vadd.f32 %v1001_v5, %v3232_v49 }
 0x14b   : > { %v631_v45 = vadd.f32 %v3792_v59, %v3791_v44  ;;  %v1022_v31 = vrot.slane %v1021_v30, 1  ;;  %v2127_v0 = vpop.eup %2126  ;;  %v933_v3 = vmul.f32 %v3241_v35, %v3797_v20  ;;  %v937_v47 = vmul.f32 %v3270_v40, %v624_v43  ;;  %v1396_v20 = vld [vmem:[%s3799_s13 + $0x18] sm:$0xff] }
 0x14c   : > { %v638_v14 = vadd.f32 %v3795_v48, %v3794_v18  ;;  %v1029_v58 = vrot.slane %v1028_v55, 1  ;;  %v1049_v38 = vadd.f32 %v1048_v1, %v1047_v60  ;;  %v645_v39 = vadd.f32 %v644_v52, %v3790_v63 }
 0x14d   : > { %v1009_v21 = vadd.f32 %v1008_v61, %v3266_v29  ;;  %v1016_v27 = vadd.f32 %v1015_v28, %v3272_v51  ;;  %v1036_v25 = vrot.slane %v1035_v50, 1  ;;  %v2129_v36 = vpop.eup %2128  ;;  %vm1356_vm1 = vcmask 1042434   ;;  %v1371_v61 = vpop.permute.xlu0 %1370 }
 0x14e   : > { %v935_v49 = vmul.f32 %v3252_v46, %v3798_v19  ;;  %v939_v23 = vmul.f32 %v3277_v13, %v631_v45  ;;  %v1043_v6 = vrot.slane %v1042_v16, 1  ;;  %v652_v35 = vadd.f32 %v651_v4, %v3793_v56 }
 0x14f   : > { %v659_v40 = vadd.f32 %v658_v37, %v3796_v24  ;;  %v1023_v41 = vadd.f32 %v1022_v31, %v1021_v30  ;;  %v1325_v10 = vmul.f32 %v2127_v0, %v1002_v26  ;;  %v2131_v60 = vpop.eup %2130  ;;  %v941_v29 = vmul.f32 %v3304_v7, %v638_v14  ;;  %v1393_v26 = vld [vmem:[%s3799_s13] sm:$0xff]  ;;  %v1394_v31 = vld [vmem:[%s3799_s13 + $0x8] sm:$0xff]  ;;  %v1395_v0 = vld [vmem:[%s3799_s13 + $0x10] sm:$0xff] }
 0x150   : > { %v1355_v51 = vsel %vm1354_vm0, %v937_v47, %v933_v3  ;;  %v1030_v15 = vadd.f32 %v1029_v58, %v1028_v55  ;;  %v1050_v53 = vrot.slane %v1049_v38, 1  ;;  %v943_v34 = vmul.f32 %v3319_v22, %v645_v39 }
 0x151   : > { %v1037_v46 = vadd.f32 %v1036_v25, %v1035_v50  ;;  %v1327_v32 = vmul.f32 %v2129_v36, %v1009_v21  ;;  %v1329_v13 = vmul.f32 %v2131_v60, %v1016_v27  ;;  %v2133_v17 = vpop.eup %2132  ;;  %v1360_v33 = vsel %vm1354_vm0, %v939_v23, %v935_v49 }
 0x152   : > { %v1044_v8 = vadd.f32 %v1043_v6, %v1042_v16  ;;  %v2135_v42 = vpop.eup %2134  ;;  %vm1358_vm2 = vcmask 1043459   ;;  %v945_v9 = vmul.f32 %v3326_v12, %v652_v35  ;;  %v1331_v54 = vmul.f32 %v2133_v17, %v1023_v41  ;;  %v1409_v35 = vpop.permute.xlu0 %1408 }
 0x153   : > { %v1381_v7 = vsel %vm1354_vm0, %v1329_v13, %v1325_v10  ;;  %v2137_v43 = vpop.eup %2136  ;;  %v947_v5 = vmul.f32 %v3335_v62, %v659_v40  ;;  %v1357_v30 = vsel %vm1356_vm1, %v941_v29, %v1355_v51  ;;  %v1051_v22 = vadd.f32 %v1050_v53, %v1049_v38 }
 0x154   : > { %v1333_v55 = vmul.f32 %v2135_v42, %v1030_v15  ;;  %v2139_v1 = vpop.eup %2138  ;;  %v1361_v2 = vsel %vm1356_vm1, %v943_v34, %v1360_v33  ;;  %v1335_v63 = vmul.f32 %v2137_v43, %v1037_v46  ;;  %v1384_v52 = vsel %vm1354_vm0, %v1331_v54, %v1327_v32  ;;  %v1538_v33 = vld [vmem:[%s3800_s17] sm:$0xff]  ;;  %v1540_v42 = vld [vmem:[%s3800_s17 + $0x10] sm:$0xff] }
 0x155   : > { %v1337_v28 = vmul.f32 %v2139_v1, %v1044_v8  ;;  %v1359_v44 = vsel %vm1358_vm2, %v945_v9, %v1357_v30  ;;  %v1362_v62 = vsel %vm1358_vm2, %v947_v5, %v1361_v2  ;;  %vm1434_vm3 = vcmask 1043456   ;;  %v1539_v8 = vld [vmem:[%s3800_s17 + $0x8] sm:$0xff]  ;;  %v1541_v9 = vld [vmem:[%s3800_s17 + $0x18] sm:$0xff] }
 0x156   : > { %v1382_v12 = vsel %vm1356_vm1, %v1333_v55, %v1381_v7  ;;  %v1385_v59 = vsel %vm1356_vm1, %v1335_v63, %v1384_v52  ;;  %v1365_v16 = vmul.f32 %v1359_v44, %v1344_v11  ;;  %v1366_v48 = vmul.f32 %v1362_v62, %v1344_v11 }
 0x157   : > { %v2141_v50 = vpop.eup %2140  ;;  %v1383_v56 = vsel %vm1358_vm2, %v1337_v28, %v1382_v12  ;;  %vm1421_vm4 = vcmask 31744   ;;  %vm1566_vm5 = vcmask 261120  }
 0x158   : > { %v1339_v45 = vmul.f32 %v2141_v50, %v1051_v22  ;;  %v1389_v4 = vmul.f32 %v1383_v56, %v1371_v61  ;;  %v1564_v22 = vpop.permute.xlu0 %1563 }
 0x15a   : > { %v1386_v18 = vsel %vm1358_vm2, %v1339_v45, %v1385_v59  ;;  %v1391_v24 = vadd.f32 %v1389_v4, %v1365_v16  ;;  %v1419_v38 = vpop.permute.xlu1 %1418 }
 0x15b   : > { %v1390_v14 = vmul.f32 %v1386_v18, %v1371_v61 }
 0x15d   : > { %v1392_v37 = vadd.f32 %v1390_v14, %v1366_v48 }
 0x15f   : > { %1956 = vmatprep.subr.msk.mxu0 %vm1434_vm3, %v1392_v37  ;;  %v1414_v25 = vpop.permute.xlu1 %1413 }
 0x160   : > { %1957 = vmatpush1.msk.msra.mxu0 %vm1434_vm3, %v1391_v24 }
 0x161   : > { %1958 = vmatmul.mubr.msk.f32.vlgmr.msra.gmra.mxu0 %vm1421_vm4, %v1393_v26  ;;  %v1676_v26 = vld [vmem:[%s3801_s8] sm:$0x1] }
 0x162   : > { %1511 = vmatprep.mubr.f32.mxu0 %v2336_v57 }
 0x163   : > { %v1404_v41 = vpop.permute.xlu1 %1403 }
 0x165   : > { %1959 = vmatmul.mubr.msk.f32.gmra.mxu0 %vm1421_vm4, %v1394_v31  ;;  %v1683_v31 = vlaneseq }
 0x166   : > { %1517 = vmatprep.mubr.f32.mxu0 %v2336_v57 }
 0x167   : > { %vm1781_vm6 = vcmp.lt.s32.totalorder %v1683_v31, 256 }
 0x169   : > { %1960 = vmatmul.mubr.msk.f32.gmra.mxu0 %vm1421_vm4, %v1395_v0  ;;  %v1684_v0 = vshrl.u32 %v1683_v31, 7 }
 0x16a   : > { %1523 = vmatprep.mubr.f32.mxu0 %v2336_v57 }
 0x16b   : > { %v1559_v1 = vpop.permute.xlu1 %1558 }
 0x16d   : > { %1961 = vmatmul.mubr.msk.f32.gmra.mxu0 %vm1421_vm4, %v1396_v20  ;;  %v2337_v20 = vmov 1966171168  }
 0x16e   : > { %1754 = vmatprep.mubr.f32.mxu0 %v2336_v57 }
 0x170   : > { %v1549_v59 = vpop.permute.xlu1 %1548 }
 0x221   : > { %v1507_v3 = vpop.f32.mrf.mxu0 }
 0x222   : > { %v1508_v53 = vadd.f32 %v1507_v3, %v1404_v41  ;;  %v1765_v3 = vunpack.c.l.s4 %v2337_v20 }
 0x223   : > { %v1509_v47 = vpop.f32.mrf.mxu0 }
 0x224   : > { %v1510_v51 = vadd.f32 %v1509_v47, %v1404_v41  ;;  %v1530_v17 = vmax.f32 %v1508_v53, 0.0  ;;  %v1685_v47 = vsub.s32 0, %v1684_v0 }
 0x225   : > { %v1513_v58 = vpop.f32.mrf.mxu0 }
 0x226   : > { %v1514_v11 = vadd.f32 %v1513_v58, %v1409_v35  ;;  %v1531_v13 = vmax.f32 %v1510_v51, 0.0 }
 0x227   : > { %v1515_v39 = vpop.f32.mrf.mxu0 }
 0x228   : > { %v1516_v10 = vadd.f32 %v1515_v39, %v1409_v35  ;;  %v1532_v32 = vmax.f32 %v1514_v11, 0.0 }
 0x229   : > { %v1519_v21 = vpop.f32.mrf.mxu0 }
 0x22a   : > { %v1520_v40 = vadd.f32 %v1519_v21, %v1414_v25  ;;  %v1533_v46 = vmax.f32 %v1516_v10, 0.0 }
 0x22b   : > { %v1521_v27 = vpop.f32.mrf.mxu0 }
 0x22c   : > { %v1522_v23 = vadd.f32 %v1521_v27, %v1414_v25  ;;  %v1534_v34 = vmax.f32 %v1520_v40, 0.0 }
 0x22d   : > { %v1525_v36 = vpop.f32.mrf.mxu0 }
 0x22e   : > { %v1526_v19 = vadd.f32 %v1525_v36, %v1419_v38  ;;  %v1535_v15 = vmax.f32 %v1522_v23, 0.0 }
 0x22f   : > { %v1527_v49 = vpop.f32.mrf.mxu0 }
 0x230   : > { %v1528_v6 = vadd.f32 %v1527_v49, %v1419_v38  ;;  %v1536_v29 = vmax.f32 %v1526_v19, 0.0  ;;  %v1766_v38 = vunpack.c.0.s8 %v1765_v3 }
 0x232   : > { %v1537_v60 = vmax.f32 %v1528_v6, 0.0  ;;  %v1769_v19 = vsub.s32 %v1766_v38, %v1684_v0 }
 0x234   : > { %1603 = vmatprep.subr.mxu1 %v1537_v60 }
 0x235   : > { %1604 = vmatpush1.msra.mxu1 %v1536_v29 }
 0x236   : > { %1605 = vmatprep.subr.mxu1 %v1535_v15 }
 0x237   : > { %1606 = vmatpush1.msra.mxu1 %v1534_v34 }
 0x238   : > { %1607 = vmatprep.subr.mxu1 %v1533_v46 }
 0x239   : > { %1608 = vmatpush1.msra.mxu1 %v1532_v32 }
 0x23a   : > { %1609 = vmatprep.subr.mxu1 %v1531_v13 }
 0x23b   : > { %1610 = vmatpush1.msra.mxu1 %v1530_v17 }
 0x23c   : > { %1962 = vmatmul.mubr.msk.f32.vlgmr.msra.gmra.mxu1 %vm1566_vm5, %v1538_v33 }
 0x23d   : > { %1649 = vmatprep.mubr.f32.mxu1 %v2336_v57 }
 0x240   : > { %1963 = vmatmul.mubr.msk.f32.gmra.mxu1 %vm1566_vm5, %v1539_v8 }
 0x241   : > { %1655 = vmatprep.mubr.f32.mxu1 %v2336_v57 }
 0x244   : > { %1964 = vmatmul.mubr.msk.f32.gmra.mxu1 %vm1566_vm5, %v1540_v42 }
 0x245   : > { %1661 = vmatprep.mubr.f32.mxu1 %v2336_v57  ;;  %v1554_v57 = vpop.permute.xlu0 %1553 }
 0x248   : > { %1965 = vmatmul.mubr.msk.f32.gmra.mxu1 %vm1566_vm5, %v1541_v9 }
 0x249   : > { %v1681_v58 = vpop.permute.xlu0 %1680 }
 0x24a   : > { %v1686_v21 = vrot.slane %v1681_v58, %v1685_v47 }
 0x2fc   : > { %v1645_v54 = vpop.f32.mrf.mxu1 }
 0x2fd   : > { %v1646_v16 = vadd.f32 %v1645_v54, %v1549_v59 }
 0x2fe   : > { %v1647_v7 = vpop.f32.mrf.mxu1 }
 0x2ff   : > { %v1648_v56 = vadd.f32 %v1647_v7, %v1549_v59  ;;  %v1668_v37 = vmax.f32 %v1646_v16, 0.0 }
 0x300   : > { %v1651_v43 = vpop.f32.mrf.mxu1 }
 0x301   : > { %v1652_v62 = vadd.f32 %v1651_v43, %v1554_v57  ;;  %v1669_v24 = vmax.f32 %v1648_v56, 0.0 }
 0x302   : > { %v1653_v5 = vpop.f32.mrf.mxu1 }
 0x303   : > { %v1654_v50 = vadd.f32 %v1653_v5, %v1554_v57  ;;  %v1670_v14 = vmax.f32 %v1652_v62, 0.0 }
 0x304   : > { %v1657_v30 = vpop.f32.mrf.mxu1 }
 0x305   : > { %v1658_v12 = vadd.f32 %v1657_v30, %v1559_v1  ;;  %v1671_v48 = vmax.f32 %v1654_v50, 0.0 }
 0x306   : > { %v1659_v55 = vpop.f32.mrf.mxu1 }
 0x307   : > { %v1660_v61 = vadd.f32 %v1659_v55, %v1559_v1  ;;  %v1672_v18 = vmax.f32 %v1658_v12, 0.0 }
 0x308   : > { %v1663_v2 = vpop.f32.mrf.mxu1 }
 0x309   : > { %v1664_v63 = vadd.f32 %v1663_v2, %v1564_v22  ;;  %v1673_v4 = vmax.f32 %v1660_v61, 0.0 }
 0x30a   : > { %v1665_v52 = vpop.f32.mrf.mxu1 }
 0x30b   : > { %v1666_v28 = vadd.f32 %v1665_v52, %v1564_v22  ;;  %v1674_v45 = vmax.f32 %v1664_v63, 0.0 }
 0x30d   : > { %v1675_v44 = vmax.f32 %v1666_v28, 0.0 }
 0x30f   : > { %1714 = vmatprep.subr.mxu0 %v1675_v44 }
 0x310   : > { %1715 = vmatpush1.msra.mxu0 %v1674_v45 }
 0x311   : > { %1716 = vmatprep.subr.mxu0 %v1673_v4 }
 0x312   : > { %1717 = vmatpush1.msra.mxu0 %v1672_v18 }
 0x313   : > { %1718 = vmatprep.subr.mxu0 %v1671_v48 }
 0x314   : > { %1719 = vmatpush1.msra.mxu0 %v1670_v14 }
 0x315   : > { %1720 = vmatprep.subr.mxu0 %v1669_v24 }
 0x316   : > { %1721 = vmatpush1.msra.mxu0 %v1668_v37 }
 0x317   : > { %1966 = vmatmul.mubr.msk.f32.vlgmr.msra.gmra.mxu0 %vm1566_vm5, %v1676_v26 }
 0x3d7   : > { %v1756_v39 = vpop.f32.mrf.mxu0 }
 0x3d8   : > { %v1757_v25 = vadd.f32 %v1756_v39, %v1686_v21 }
 0x3d9   : > { %v1758_v27 = vpop.f32.mrf.mxu0 }
 0x3da   : > { %v1759_v36 = vadd.f32 %v1758_v27, %v1686_v21 }
 0x3dc   : > { %v1763_v49 = vcombine.low %v1757_v25, %v1759_v36 }
 0x3de   : > { %v1770_v23 = vrot.slane %v1763_v49, %v1769_v19 }
 0x3e0   : > { %v1777_v6 = vrot.slane %v1770_v23, %v1769_v19 }
 0x3e2   : > { %1783 = vst.msk [vmem:[%s550_s30] sm:$0x3] %vm1781_vm6, %v1777_v6 }
 0x3e3   : > { %2267 = shalt.err (!%p2264_p0)
}
 0x3e4   : > { %s2268_s0 = scalar_lea.hbm %s1797_s21, 32  ;;  %s2272_s27 = scalar_lea.hbm %s3804_s29, 64 }
 0x3e5   : > { %p2269_p1 = scmp.ne.s32.totalorder %s1797_s21, %s2268_s0  ;;  %p2273_p7 = scmp.lt.s32.totalorder %s1797_s21, %s3804_s29 }
 0x3e6   : > { %p2274_p3 = scmp.lt.s32.totalorder %s2272_s27, %s2268_s0 }
 0x3e7   : > { %p2270_p11 = pnand %p2269_p1, %p3805_p10 }
 0x3e8   : > { %p2275_p8 = por %p2274_p3, %p2273_p7 }
 0x3e9   : > { %p2271_p5 = pneg %p2270_p11 }
 0x3eb   : > { %p2276_p13 = pnand %p2275_p8, %p2271_p5 }
 0x3ed   : > { %2279 = shalt.err (!%p2276_p13)
}
 0x3ee   : > { %1985 = dma.vmem_to_hbm [thread:$0]  (%p3805_p10), %s1800_s1, 32, %s1797_s21, %s1785_s18  }
 0x3ef PF: > { %s3806_s8 = sld [smem:[#allocation16_spill]] }
 0x3f0   : > { %s3807_s26 = sld [smem:[#allocation22_spill]] }
 0x3f1   : > { %s3808_s10 = sld [smem:[#allocation18_spill]] }
 0x3f5   : > { %s1811_s30 = sand.u32 1, %s3806_s8  }
 0x3f6   : > { %p3809_p2 = scmp.ne.s32.totalorder %s3807_s26, 0  ;;  %s1812_s12 = scalar_lea.sflag [#allocation5], %s1811_s30 }
 0x3f7   : > { %p3810_p4 = scmp.ge.s32.totalorder %s3808_s10, 2 }
 0x3f9   : > { %p2001_p6 = pnand %p3810_p4, %p3809_p2 }
 0x3fb   : > { %p2002_p9 = pneg %p2001_p6 }
 0x3fd   : > { %2309 = dma.done.wait (%p2002_p9), %s1812_s12, 32  }
 0x3fe   : > { %2311 = vsyncadd (%p2002_p9), %s1812_s12, 4294967264  ;;  %s3811_s26 = sld [smem:[#allocation19_spill]]  ;;  %s3814_s23 = smov %s2318_s24 }
 0x3ff   : > { %s3812_s14 = sld [smem:[#allocation17_spill]] }
 0x400   : > { %s3813_s25 = sld [smem:[#allocation20_spill]] }
 0x404   : > { %p33_p12 = scmp.ge.s32.totalorder %s3811_s26, 4  }
 0x405   : > { %s3815_s24 = smov %s3812_s14 }
 0x406   :  { %35 = sbr.rel (!%p33_p12) target bundleno = 16 (0x10), region = 150 }
 0x40b   :  { %1817 = vsyncpa [#allocation4], 1 }
 0x40c   :  { %1819 = vsyncpa [#allocation4 + $0x1], 1 }
 0x40d   :  { %1820 = vsyncpa [#allocation7], 1 }
 0x40e   :  { %1822 = vsyncpa [#allocation7 + $0x1], 1 }
 0x40f   :  { %1823 = vsyncpa [#allocation10], 1 }
 0x410   :  { %1825 = vsyncpa [#allocation10 + $0x1], 1 }
 0x411   :  { %1826 = vsyncpa [#allocation5], 1 }
 0x412   :  { %1828 = vsyncpa [#allocation5 + $0x1], 1 }

</bundles_post_ra>
